<compile_context>
chip_gen: v5e
topology: v5e:2x2
jax: 0.10.0
libtpu: 0.0.40
codegen_flags: <defaults>
</compile_context>

<pallas_src>
import numpy as np
import jax
import jax.numpy as jnp
from jax import lax
from jax.experimental import pallas as pl
from jax.experimental.pallas import tpu as pltpu

# ---------------- problem sizes (small, consistent with the module) ----------
B = 2              # batch
ACTION_DIM = 16    # H (action_dim)
DAY_LEN = 8        # W (day_length)
IN_CH = 4          # input channels (= out_ch1, alpha = 1)
OUT1 = 4           # out_ch1
OUT2 = 16          # out_ch2
CW = IN_CH * DAY_LEN          # flattened channel*width = 32
BH = B * ACTION_DIM           # stacked batch*action rows = 32
EPS = 1e-5                    # nn.LayerNorm default eps


# ---------------- in-kernel helpers ------------------------------------------
def _gelu(x):
    # tanh-approx GELU (transcendental goes to the EUP); error vs the exact
    # erf GELU is ~1e-3, well inside the verification tolerance.
    c0 = np.float32(0.7978845608028654)   # sqrt(2/pi)
    c1 = np.float32(0.044715)
    return 0.5 * x * (1.0 + jnp.tanh(c0 * (x + c1 * x * x * x)))


def _sample_select(per_sample_scalars):
    # Broadcast B per-sample (1,1) scalars into a (BH,1) column, one value per
    # 16-row block (segmented broadcast for the stacked-batch layout).
    row = lax.broadcasted_iota(jnp.int32, (BH, 1), 0)
    out = jnp.zeros((BH, 1), jnp.float32)
    for b in range(B):
        sel = jnp.logical_and(row >= b * ACTION_DIM, row < (b + 1) * ACTION_DIM)
        out = jnp.where(sel, per_sample_scalars[b], out)
    return out


def _ln_per_sample(x):
    # LayerNorm (elementwise_affine=False) over each sample's 16-row block of
    # the stacked (BH, D) activation.
    means, invs = [], []
    for b in range(B):
        blk = x[b * ACTION_DIM:(b + 1) * ACTION_DIM, :]
        m = jnp.mean(blk, keepdims=True)
        v = jnp.mean(jnp.square(blk - m), keepdims=True)   # biased var (torch)
        means.append(m)
        invs.append(lax.rsqrt(v + EPS))
    return (x - _sample_select(means)) * _sample_select(invs)


def _concat_ln_stats(x1, x2, x3):
    # Per-sample mean / inv-std of cat([x1,x2,x3], channel axis) without
    # materializing the concat (equal-sized chunks -> mean of means is exact).
    means, invs = [], []
    for b in range(B):
        sl = slice(b * ACTION_DIM, (b + 1) * ACTION_DIM)
        b1, b2, b3 = x1[sl, :], x2[sl, :], x3[sl, :]
        m = (jnp.mean(b1, keepdims=True) + jnp.mean(b2, keepdims=True)
             + jnp.mean(b3, keepdims=True)) / 3.0
        msq = (jnp.mean(b1 * b1, keepdims=True) + jnp.mean(b2 * b2, keepdims=True)
               + jnp.mean(b3 * b3, keepdims=True)) / 3.0
        means.append(m)
        invs.append(lax.rsqrt(msq - m * m + EPS))
    return _sample_select(means), _sample_select(invs)


# ---------------- the Pallas kernel -------------------------------------------
def cnn_tcn_kernel(s_ref, w_ref, md_ref, mp_ref, mc_ref, cs_ref, m2_ref,
                   w3a_ref, w3b_ref, o_ref):
    x = s_ref[...]                                   # (BH, CW) f32

    def bdot(a, b):                                  # bf16 MXU, f32 accumulate
        return jnp.dot(a.astype(jnp.bfloat16), b,
                       preferred_element_type=jnp.float32)

    def dconv(inp, i):
        # DConv_i: dilated (1,3) conv -> per-sample LayerNorm -> 1x1 conv -> GELU
        y = bdot(inp, md_ref[i])
        y = _ln_per_sample(y)
        y = bdot(y, mp_ref[i])
        return _gelu(y)

    x1 = dconv(x, 0)
    x2 = dconv(x + x1, 1)
    x3 = dconv(x + x1 + x2, 2)

    # Conv = LayerNorm(cat([x1,x2,x3], ch)) followed by a 1x1 conv (12 -> 4).
    # The shared per-sample affine (x_i - m)*inv is folded through the Mc
    # matmuls:  xc = ((x1@Mc0 + x2@Mc1 + x3@Mc2) - m * colsum(Mc)) * inv.
    raw = bdot(x1, mc_ref[0]) + bdot(x2, mc_ref[1]) + bdot(x3, mc_ref[2])
    m_col, inv_col = _concat_ln_stats(x1, x2, x3)
    xc = (raw - m_col * cs_ref[...]) * inv_col       # (BH, CW)

    # Conv2: (1, day_length) conv collapses the width axis -> (BH, 16), then LN.
    y = bdot(xc, m2_ref[...])
    y = _ln_per_sample(y)

    # Conv3: 1x1 conv over 17 channels (16 features + portfolio weight w)
    # as a lane reduction + SMEM-scalar * w, then LN over the action dim.
    z = (jnp.sum(y * w3a_ref[...], axis=-1, keepdims=True)
         + w3b_ref[0, 0] * w_ref[...])               # (BH, 1)
    o_ref[...] = _ln_per_sample(z)


# ---------------- host-side matrix construction (glue) ------------------------
def build_mats(Wd, Wp, Wc, Wc2, Wc3):
    Wdl = DAY_LEN
    C, O = IN_CH, OUT1
    eyeW = np.eye(Wdl, dtype=np.float32)

    md_list, mp_list = [], []
    for i in range(3):
        wd = np.asarray(Wd[i])[:, :, 0, :]          # (O, C, 3)
        md = np.zeros((C * Wdl, O * Wdl), np.float32)
        for o in range(O):
            for c in range(C):
                for k in range(3):
                    off = 2 * k - 2                  # dilation=2, padding=2
                    for wo in range(Wdl):
                        wi = wo + off
                        if 0 <= wi < Wdl:
                            md[c * Wdl + wi, o * Wdl + wo] += wd[o, c, k]
        md_list.append(md)
        wp = np.asarray(Wp[i])[:, :, 0, 0]           # (O, C)
        mp_list.append(np.kron(wp.T, eyeW).astype(np.float32))

    Md = np.stack(md_list)                           # (3, CW, CW)
    Mp = np.stack(mp_list)                           # (3, CW, CW)

    wc = np.asarray(Wc)[:, :, 0, 0]                  # (4, 12)
    Mc = np.stack([np.kron(wc[:, 4 * i:4 * (i + 1)].T, eyeW).astype(np.float32)
                   for i in range(3)])               # (3, CW, CW)

    wc2 = np.asarray(Wc2)[:, :, 0, :]                # (16, 4, W)
    M2 = np.ascontiguousarray(
        np.transpose(wc2, (1, 2, 0)).reshape(C * Wdl, OUT2)).astype(np.float32)

    wc3 = np.asarray(Wc3)[:, :, 0, 0]                # (1, 17)
    W3a = wc3[0, :OUT2].reshape(1, OUT2).astype(np.float32)   # lane-dense row
    W3b = wc3[0, OUT2:].reshape(1, 1).astype(np.float32)      # SMEM scalar

    # bf16 matmul operands (MXU-native); column-sum row for the fused concat-LN
    # is computed from the bf16-rounded Mc so the fusion is exactly consistent.
    Md_b = jnp.asarray(Md, jnp.bfloat16)
    Mp_b = jnp.asarray(Mp, jnp.bfloat16)
    Mc_b = jnp.asarray(Mc, jnp.bfloat16)
    M2_b = jnp.asarray(M2, jnp.bfloat16)
    McCol = jnp.sum(Mc_b.astype(jnp.float32), axis=(0, 1)).reshape(1, OUT1 * DAY_LEN)

    return (Md_b, Mp_b, Mc_b, McCol, M2_b,
            jnp.asarray(W3a), jnp.asarray(W3b))


# ---------------- wrapper around pallas_call -----------------------------------
def cnn_tcn_forward(s, w, mats):
    # s: (B, action_dim, day_length, 4) channels-last (as the torch forward
    # expects before .permute(0,3,1,2));  w: (B, action_dim)
    Md, Mp, Mc, McCol, M2, W3a, W3b = mats
    s_nchw = jnp.transpose(s, (0, 3, 1, 2))                          # (B, C, H, W)
    s_flat = jnp.transpose(s_nchw, (0, 2, 1, 3)).reshape(BH, CW)     # stacked rows
    w_col = w.reshape(BH, 1).astype(jnp.float32)

    vmem = pl.BlockSpec(memory_space=pltpu.MemorySpace.VMEM)
    smem = pl.BlockSpec(memory_space=pltpu.MemorySpace.SMEM)

    out = pl.pallas_call(
        cnn_tcn_kernel,
        out_shape=jax.ShapeDtypeStruct((BH, 1), jnp.float32),
        in_specs=[vmem,    # s (stacked activation slab)
                  vmem,    # w column
                  vmem,    # dilated-conv matrices (bf16)
                  vmem,    # 1x1-in-DConv matrices (bf16)
                  vmem,    # Conv (12->4) block matrices (bf16)
                  vmem,    # column sums of Mc (fused concat-LN)
                  vmem,    # Conv2 (1,W) collapse matrix (bf16)
                  vmem,    # Conv3 feature weights (1,16)
                  smem],   # Conv3 portfolio-weight scalar
        out_specs=vmem,
    )(s_flat, w_col, Md, Mp, Mc, McCol, M2, W3a, W3b)
    return out.reshape(B, ACTION_DIM)


# ---------------- pure-JAX reference (for verification) ------------------------
def reference_forward(s, w, Wd, Wp, Wc, Wc2, Wc3):
    dn = ('NCHW', 'OIHW', 'NCHW')

    def conv(x, wgt, padding, rhs_dilation=(1, 1)):
        return lax.conv_general_dilated(x, wgt, (1, 1), padding,
                                        rhs_dilation=rhs_dilation,
                                        dimension_numbers=dn)

    def ln(x):
        m = jnp.mean(x, axis=(1, 2, 3), keepdims=True)
        v = jnp.mean((x - m) ** 2, axis=(1, 2, 3), keepdims=True)
        return (x - m) / jnp.sqrt(v + EPS)

    x = jnp.transpose(s, (0, 3, 1, 2))

    def dblock(t, i):
        y = conv(t, Wd[i], ((0, 0), (2, 2)), rhs_dilation=(2, 2))
        y = ln(y)
        y = conv(y, Wp[i], ((0, 0), (0, 0)))
        return jax.nn.gelu(y, approximate=False)

    x1 = dblock(x, 0)
    x2 = dblock(x + x1, 1)
    x3 = dblock(x + x1 + x2, 2)
    xc = jnp.concatenate([x1, x2, x3], axis=1)
    xc = conv(ln(xc), Wc, ((0, 0), (0, 0)))
    y = conv(xc, Wc2, ((0, 0), (0, 0)))          # (B, 16, H, 1)
    y = ln(y)
    y = jnp.concatenate([y, w[:, None, :, None]], axis=1)
    y = conv(y, Wc3, ((0, 0), (0, 0)))           # (B, 1, H, 1)
    y = ln(y)
    return y[:, 0, :, 0]


# ---------------- main ----------------------------------------------------------
if __name__ == "__main__":
    key = jax.random.PRNGKey(0)
    keys = jax.random.split(key, 12)

    def winit(k, shape):
        return 0.2 * jax.random.normal(k, shape, jnp.float32)

    # deterministic synthetic parameters (shapes per the module __init__)
    Wd = [winit(keys[i], (OUT1, IN_CH, 1, 3)) for i in range(3)]       # DConv dilated convs
    Wp = [winit(keys[3 + i], (OUT1, OUT1, 1, 1)) for i in range(3)]    # DConv 1x1 convs
    Wc = winit(keys[6], (OUT1, OUT1 * 3, 1, 1))                        # Conv 1x1 (12->4)
    Wc2 = winit(keys[7], (OUT2, OUT1, 1, DAY_LEN))                     # Conv2 (1, day_length)
    Wc3 = winit(keys[8], (1, OUT2 + 1, 1, 1))                          # Conv3 1x1 (17->1)

    s = jax.random.normal(keys[9], (B, ACTION_DIM, DAY_LEN, IN_CH), jnp.float32)
    w = jax.random.normal(keys[10], (B, ACTION_DIM), jnp.float32)

    mats = build_mats(Wd, Wp, Wc, Wc2, Wc3)

    out = cnn_tcn_forward(s, w, mats)
    out = jax.block_until_ready(out)

    ref = jax.block_until_ready(reference_forward(s, w, Wd, Wp, Wc, Wc2, Wc3))
    # Tolerance covers bf16 MXU operands + tanh-GELU (per perf review); the
    # all-f32 variant of this kernel matched the exact reference at 2e-2.
    np.testing.assert_allclose(np.asarray(out), np.asarray(ref), rtol=3e-2, atol=3e-2)

    print("KERNEL_OK")
</pallas_src>

<mosaic_0001>
module attributes {stable_mosaic.version = 11 : i64} {
  func.func @cnn_tcn_kernel(%arg0: memref<32x32xf32, #tpu.memory_space<vmem>>, %arg1: memref<32x1xf32, #tpu.memory_space<vmem>>, %arg2: memref<3x32x32xbf16, #tpu.memory_space<vmem>>, %arg3: memref<3x32x32xbf16, #tpu.memory_space<vmem>>, %arg4: memref<3x32x32xbf16, #tpu.memory_space<vmem>>, %arg5: memref<1x32xf32, #tpu.memory_space<vmem>>, %arg6: memref<32x16xbf16, #tpu.memory_space<vmem>>, %arg7: memref<1x16xf32, #tpu.memory_space<vmem>>, %arg8: memref<1x1xf32, #tpu.memory_space<smem>>, %arg9: memref<32x1xf32, #tpu.memory_space<vmem>>) attributes {dimension_semantics = [], scalar_prefetch = 0 : i64, scratch_operands = 0 : i64, tpu.core_type = #tpu.core_type<tc>} {
    %c0 = arith.constant 0 : index
    %c0_0 = arith.constant 0 : index
    %0 = vector.load %arg0[%c0, %c0_0] : memref<32x32xf32, #tpu.memory_space<vmem>>, vector<32x32xf32>
    %c0_1 = arith.constant 0 : index
    %c0_2 = arith.constant 0 : index
    %c0_3 = arith.constant 0 : index
    %1 = vector.load %arg2[%c0_1, %c0_2, %c0_3] : memref<3x32x32xbf16, #tpu.memory_space<vmem>>, vector<1x32x32xbf16>
    %2 = vector.shape_cast %1 : vector<1x32x32xbf16> to vector<32x32xbf16>
    %3 = arith.truncf %0 : vector<32x32xf32> to vector<32x32xbf16>
    %cst = arith.constant dense<0.000000e+00> : vector<32x32xf32>
    %4 = tpu.matmul %3, %2, %cst {dimension_numbers = #tpu.dot_dimension_numbers<[1], [0], [0], [1], [0, 0, 1, 1], [], []>} : vector<32x32xbf16>, vector<32x32xbf16>, vector<32x32xf32> -> vector<32x32xf32>
    %5 = vector.extract_strided_slice %4 {offsets = [0, 0], sizes = [16, 32], strides = [1, 1]} : vector<32x32xf32> to vector<16x32xf32>
    %6 = vector.shape_cast %5 : vector<16x32xf32> to vector<1x16x32xf32>
    %cst_4 = arith.constant dense<0.000000e+00> : vector<1xf32>
    %7 = vector.multi_reduction <add>, %6, %cst_4 [1, 2] : vector<1x16x32xf32> to vector<1xf32>
    %8 = vector.shape_cast %7 : vector<1xf32> to vector<1x1x1xf32>
    %9 = vector.extract %8[0, 0, 0] : f32 from vector<1x1x1xf32>
    %10 = vector.broadcast %9 : f32 to vector<1x1xf32>
    %cst_5 = arith.constant 5.120000e+02 : f32
    %11 = vector.broadcast %cst_5 : f32 to vector<1x1xf32>
    %12 = arith.divf %10, %11 : vector<1x1xf32>
    %13 = vector.broadcast %12 : vector<1x1xf32> to vector<16x32xf32>
    %14 = arith.subf %5, %13 : vector<16x32xf32>
    %15 = arith.mulf %14, %14 : vector<16x32xf32>
    %16 = vector.shape_cast %15 : vector<16x32xf32> to vector<1x16x32xf32>
    %cst_6 = arith.constant dense<0.000000e+00> : vector<1xf32>
    %17 = vector.multi_reduction <add>, %16, %cst_6 [1, 2] : vector<1x16x32xf32> to vector<1xf32>
    %18 = vector.shape_cast %17 : vector<1xf32> to vector<1x1x1xf32>
    %19 = vector.extract %18[0, 0, 0] : f32 from vector<1x1x1xf32>
    %20 = vector.broadcast %19 : f32 to vector<1x1xf32>
    %cst_7 = arith.constant 5.120000e+02 : f32
    %21 = vector.broadcast %cst_7 : f32 to vector<1x1xf32>
    %22 = arith.divf %20, %21 : vector<1x1xf32>
    %cst_8 = arith.constant 9.99999974E-6 : f32
    %23 = vector.broadcast %cst_8 : f32 to vector<1x1xf32>
    %24 = arith.addf %22, %23 : vector<1x1xf32>
    %25 = math.rsqrt %24 : vector<1x1xf32>
    %26 = vector.extract_strided_slice %4 {offsets = [16, 0], sizes = [16, 32], strides = [1, 1]} : vector<32x32xf32> to vector<16x32xf32>
    %27 = vector.shape_cast %26 : vector<16x32xf32> to vector<1x16x32xf32>
    %cst_9 = arith.constant dense<0.000000e+00> : vector<1xf32>
    %28 = vector.multi_reduction <add>, %27, %cst_9 [1, 2] : vector<1x16x32xf32> to vector<1xf32>
    %29 = vector.shape_cast %28 : vector<1xf32> to vector<1x1x1xf32>
    %30 = vector.extract %29[0, 0, 0] : f32 from vector<1x1x1xf32>
    %31 = vector.broadcast %30 : f32 to vector<1x1xf32>
    %cst_10 = arith.constant 5.120000e+02 : f32
    %32 = vector.broadcast %cst_10 : f32 to vector<1x1xf32>
    %33 = arith.divf %31, %32 : vector<1x1xf32>
    %34 = vector.broadcast %33 : vector<1x1xf32> to vector<16x32xf32>
    %35 = arith.subf %26, %34 : vector<16x32xf32>
    %36 = arith.mulf %35, %35 : vector<16x32xf32>
    %37 = vector.shape_cast %36 : vector<16x32xf32> to vector<1x16x32xf32>
    %cst_11 = arith.constant dense<0.000000e+00> : vector<1xf32>
    %38 = vector.multi_reduction <add>, %37, %cst_11 [1, 2] : vector<1x16x32xf32> to vector<1xf32>
    %39 = vector.shape_cast %38 : vector<1xf32> to vector<1x1x1xf32>
    %40 = vector.extract %39[0, 0, 0] : f32 from vector<1x1x1xf32>
    %41 = vector.broadcast %40 : f32 to vector<1x1xf32>
    %cst_12 = arith.constant 5.120000e+02 : f32
    %42 = vector.broadcast %cst_12 : f32 to vector<1x1xf32>
    %43 = arith.divf %41, %42 : vector<1x1xf32>
    %cst_13 = arith.constant 9.99999974E-6 : f32
    %44 = vector.broadcast %cst_13 : f32 to vector<1x1xf32>
    %45 = arith.addf %43, %44 : vector<1x1xf32>
    %46 = math.rsqrt %45 : vector<1x1xf32>
    %47 = tpu.iota {dimensions = array<i32: 0>} : vector<32x1xi32>
    %cst_14 = arith.constant 0.000000e+00 : f32
    %48 = vector.broadcast %cst_14 : f32 to vector<32x1xf32>
    %c0_i32 = arith.constant 0 : i32
    %49 = vector.broadcast %c0_i32 : i32 to vector<32x1xi32>
    %50 = arith.cmpi sge, %47, %49 : vector<32x1xi32>
    %c16_i32 = arith.constant 16 : i32
    %51 = vector.broadcast %c16_i32 : i32 to vector<32x1xi32>
    %52 = arith.cmpi slt, %47, %51 : vector<32x1xi32>
    %53 = arith.andi %50, %52 : vector<32x1xi1>
    %54 = vector.shape_cast %12 : vector<1x1xf32> to vector<1x1xf32>
    %55 = vector.broadcast %54 : vector<1x1xf32> to vector<32x1xf32>
    %56 = arith.select %53, %55, %48 : vector<32x1xi1>, vector<32x1xf32>
    %c16_i32_15 = arith.constant 16 : i32
    %57 = vector.broadcast %c16_i32_15 : i32 to vector<32x1xi32>
    %58 = arith.cmpi sge, %47, %57 : vector<32x1xi32>
    %c32_i32 = arith.constant 32 : i32
    %59 = vector.broadcast %c32_i32 : i32 to vector<32x1xi32>
    %60 = arith.cmpi slt, %47, %59 : vector<32x1xi32>
    %61 = arith.andi %58, %60 : vector<32x1xi1>
    %62 = vector.shape_cast %33 : vector<1x1xf32> to vector<1x1xf32>
    %63 = vector.broadcast %62 : vector<1x1xf32> to vector<32x1xf32>
    %64 = arith.select %61, %63, %56 : vector<32x1xi1>, vector<32x1xf32>
    %65 = vector.broadcast %64 : vector<32x1xf32> to vector<32x32xf32>
    %66 = arith.subf %4, %65 : vector<32x32xf32>
    %67 = tpu.iota {dimensions = array<i32: 0>} : vector<32x1xi32>
    %cst_16 = arith.constant 0.000000e+00 : f32
    %68 = vector.broadcast %cst_16 : f32 to vector<32x1xf32>
    %c0_i32_17 = arith.constant 0 : i32
    %69 = vector.broadcast %c0_i32_17 : i32 to vector<32x1xi32>
    %70 = arith.cmpi sge, %67, %69 : vector<32x1xi32>
    %c16_i32_18 = arith.constant 16 : i32
    %71 = vector.broadcast %c16_i32_18 : i32 to vector<32x1xi32>
    %72 = arith.cmpi slt, %67, %71 : vector<32x1xi32>
    %73 = arith.andi %70, %72 : vector<32x1xi1>
    %74 = vector.shape_cast %25 : vector<1x1xf32> to vector<1x1xf32>
    %75 = vector.broadcast %74 : vector<1x1xf32> to vector<32x1xf32>
    %76 = arith.select %73, %75, %68 : vector<32x1xi1>, vector<32x1xf32>
    %c16_i32_19 = arith.constant 16 : i32
    %77 = vector.broadcast %c16_i32_19 : i32 to vector<32x1xi32>
    %78 = arith.cmpi sge, %67, %77 : vector<32x1xi32>
    %c32_i32_20 = arith.constant 32 : i32
    %79 = vector.broadcast %c32_i32_20 : i32 to vector<32x1xi32>
    %80 = arith.cmpi slt, %67, %79 : vector<32x1xi32>
    %81 = arith.andi %78, %80 : vector<32x1xi1>
    %82 = vector.shape_cast %46 : vector<1x1xf32> to vector<1x1xf32>
    %83 = vector.broadcast %82 : vector<1x1xf32> to vector<32x1xf32>
    %84 = arith.select %81, %83, %76 : vector<32x1xi1>, vector<32x1xf32>
    %85 = vector.broadcast %84 : vector<32x1xf32> to vector<32x32xf32>
    %86 = arith.mulf %66, %85 : vector<32x32xf32>
    %c0_21 = arith.constant 0 : index
    %c0_22 = arith.constant 0 : index
    %c0_23 = arith.constant 0 : index
    %87 = vector.load %arg3[%c0_21, %c0_22, %c0_23] : memref<3x32x32xbf16, #tpu.memory_space<vmem>>, vector<1x32x32xbf16>
    %88 = vector.shape_cast %87 : vector<1x32x32xbf16> to vector<32x32xbf16>
    %89 = arith.truncf %86 : vector<32x32xf32> to vector<32x32xbf16>
    %cst_24 = arith.constant dense<0.000000e+00> : vector<32x32xf32>
    %90 = tpu.matmul %89, %88, %cst_24 {dimension_numbers = #tpu.dot_dimension_numbers<[1], [0], [0], [1], [0, 0, 1, 1], [], []>} : vector<32x32xbf16>, vector<32x32xbf16>, vector<32x32xf32> -> vector<32x32xf32>
    %cst_25 = arith.constant 5.000000e-01 : f32
    %91 = vector.broadcast %cst_25 : f32 to vector<32x32xf32>
    %92 = arith.mulf %91, %90 : vector<32x32xf32>
    %cst_26 = arith.constant 4.471500e-02 : f32
    %93 = vector.broadcast %cst_26 : f32 to vector<32x32xf32>
    %94 = arith.mulf %93, %90 : vector<32x32xf32>
    %95 = arith.mulf %94, %90 : vector<32x32xf32>
    %96 = arith.mulf %95, %90 : vector<32x32xf32>
    %97 = arith.addf %90, %96 : vector<32x32xf32>
    %cst_27 = arith.constant 0.797884583 : f32
    %98 = vector.broadcast %cst_27 : f32 to vector<32x32xf32>
    %99 = arith.mulf %98, %97 : vector<32x32xf32>
    %100 = math.tanh %99 : vector<32x32xf32>
    %cst_28 = arith.constant 1.000000e+00 : f32
    %101 = vector.broadcast %cst_28 : f32 to vector<32x32xf32>
    %102 = arith.addf %101, %100 : vector<32x32xf32>
    %103 = arith.mulf %92, %102 : vector<32x32xf32>
    %104 = arith.addf %0, %103 : vector<32x32xf32>
    %c1 = arith.constant 1 : index
    %c0_29 = arith.constant 0 : index
    %c0_30 = arith.constant 0 : index
    %105 = vector.load %arg2[%c1, %c0_29, %c0_30] : memref<3x32x32xbf16, #tpu.memory_space<vmem>>, vector<1x32x32xbf16>
    %106 = vector.shape_cast %105 : vector<1x32x32xbf16> to vector<32x32xbf16>
    %107 = arith.truncf %104 : vector<32x32xf32> to vector<32x32xbf16>
    %cst_31 = arith.constant dense<0.000000e+00> : vector<32x32xf32>
    %108 = tpu.matmul %107, %106, %cst_31 {dimension_numbers = #tpu.dot_dimension_numbers<[1], [0], [0], [1], [0, 0, 1, 1], [], []>} : vector<32x32xbf16>, vector<32x32xbf16>, vector<32x32xf32> -> vector<32x32xf32>
    %109 = vector.extract_strided_slice %108 {offsets = [0, 0], sizes = [16, 32], strides = [1, 1]} : vector<32x32xf32> to vector<16x32xf32>
    %110 = vector.shape_cast %109 : vector<16x32xf32> to vector<1x16x32xf32>
    %cst_32 = arith.constant dense<0.000000e+00> : vector<1xf32>
    %111 = vector.multi_reduction <add>, %110, %cst_32 [1, 2] : vector<1x16x32xf32> to vector<1xf32>
    %112 = vector.shape_cast %111 : vector<1xf32> to vector<1x1x1xf32>
    %113 = vector.extract %112[0, 0, 0] : f32 from vector<1x1x1xf32>
    %114 = vector.broadcast %113 : f32 to vector<1x1xf32>
    %cst_33 = arith.constant 5.120000e+02 : f32
    %115 = vector.broadcast %cst_33 : f32 to vector<1x1xf32>
    %116 = arith.divf %114, %115 : vector<1x1xf32>
    %117 = vector.broadcast %116 : vector<1x1xf32> to vector<16x32xf32>
    %118 = arith.subf %109, %117 : vector<16x32xf32>
    %119 = arith.mulf %118, %118 : vector<16x32xf32>
    %120 = vector.shape_cast %119 : vector<16x32xf32> to vector<1x16x32xf32>
    %cst_34 = arith.constant dense<0.000000e+00> : vector<1xf32>
    %121 = vector.multi_reduction <add>, %120, %cst_34 [1, 2] : vector<1x16x32xf32> to vector<1xf32>
    %122 = vector.shape_cast %121 : vector<1xf32> to vector<1x1x1xf32>
    %123 = vector.extract %122[0, 0, 0] : f32 from vector<1x1x1xf32>
    %124 = vector.broadcast %123 : f32 to vector<1x1xf32>
    %cst_35 = arith.constant 5.120000e+02 : f32
    %125 = vector.broadcast %cst_35 : f32 to vector<1x1xf32>
    %126 = arith.divf %124, %125 : vector<1x1xf32>
    %cst_36 = arith.constant 9.99999974E-6 : f32
    %127 = vector.broadcast %cst_36 : f32 to vector<1x1xf32>
    %128 = arith.addf %126, %127 : vector<1x1xf32>
    %129 = math.rsqrt %128 : vector<1x1xf32>
    %130 = vector.extract_strided_slice %108 {offsets = [16, 0], sizes = [16, 32], strides = [1, 1]} : vector<32x32xf32> to vector<16x32xf32>
    %131 = vector.shape_cast %130 : vector<16x32xf32> to vector<1x16x32xf32>
    %cst_37 = arith.constant dense<0.000000e+00> : vector<1xf32>
    %132 = vector.multi_reduction <add>, %131, %cst_37 [1, 2] : vector<1x16x32xf32> to vector<1xf32>
    %133 = vector.shape_cast %132 : vector<1xf32> to vector<1x1x1xf32>
    %134 = vector.extract %133[0, 0, 0] : f32 from vector<1x1x1xf32>
    %135 = vector.broadcast %134 : f32 to vector<1x1xf32>
    %cst_38 = arith.constant 5.120000e+02 : f32
    %136 = vector.broadcast %cst_38 : f32 to vector<1x1xf32>
    %137 = arith.divf %135, %136 : vector<1x1xf32>
    %138 = vector.broadcast %137 : vector<1x1xf32> to vector<16x32xf32>
    %139 = arith.subf %130, %138 : vector<16x32xf32>
    %140 = arith.mulf %139, %139 : vector<16x32xf32>
    %141 = vector.shape_cast %140 : vector<16x32xf32> to vector<1x16x32xf32>
    %cst_39 = arith.constant dense<0.000000e+00> : vector<1xf32>
    %142 = vector.multi_reduction <add>, %141, %cst_39 [1, 2] : vector<1x16x32xf32> to vector<1xf32>
    %143 = vector.shape_cast %142 : vector<1xf32> to vector<1x1x1xf32>
    %144 = vector.extract %143[0, 0, 0] : f32 from vector<1x1x1xf32>
    %145 = vector.broadcast %144 : f32 to vector<1x1xf32>
    %cst_40 = arith.constant 5.120000e+02 : f32
    %146 = vector.broadcast %cst_40 : f32 to vector<1x1xf32>
    %147 = arith.divf %145, %146 : vector<1x1xf32>
    %cst_41 = arith.constant 9.99999974E-6 : f32
    %148 = vector.broadcast %cst_41 : f32 to vector<1x1xf32>
    %149 = arith.addf %147, %148 : vector<1x1xf32>
    %150 = math.rsqrt %149 : vector<1x1xf32>
    %151 = tpu.iota {dimensions = array<i32: 0>} : vector<32x1xi32>
    %cst_42 = arith.constant 0.000000e+00 : f32
    %152 = vector.broadcast %cst_42 : f32 to vector<32x1xf32>
    %c0_i32_43 = arith.constant 0 : i32
    %153 = vector.broadcast %c0_i32_43 : i32 to vector<32x1xi32>
    %154 = arith.cmpi sge, %151, %153 : vector<32x1xi32>
    %c16_i32_44 = arith.constant 16 : i32
    %155 = vector.broadcast %c16_i32_44 : i32 to vector<32x1xi32>
    %156 = arith.cmpi slt, %151, %155 : vector<32x1xi32>
    %157 = arith.andi %154, %156 : vector<32x1xi1>
    %158 = vector.shape_cast %116 : vector<1x1xf32> to vector<1x1xf32>
    %159 = vector.broadcast %158 : vector<1x1xf32> to vector<32x1xf32>
    %160 = arith.select %157, %159, %152 : vector<32x1xi1>, vector<32x1xf32>
    %c16_i32_45 = arith.constant 16 : i32
    %161 = vector.broadcast %c16_i32_45 : i32 to vector<32x1xi32>
    %162 = arith.cmpi sge, %151, %161 : vector<32x1xi32>
    %c32_i32_46 = arith.constant 32 : i32
    %163 = vector.broadcast %c32_i32_46 : i32 to vector<32x1xi32>
    %164 = arith.cmpi slt, %151, %163 : vector<32x1xi32>
    %165 = arith.andi %162, %164 : vector<32x1xi1>
    %166 = vector.shape_cast %137 : vector<1x1xf32> to vector<1x1xf32>
    %167 = vector.broadcast %166 : vector<1x1xf32> to vector<32x1xf32>
    %168 = arith.select %165, %167, %160 : vector<32x1xi1>, vector<32x1xf32>
    %169 = vector.broadcast %168 : vector<32x1xf32> to vector<32x32xf32>
    %170 = arith.subf %108, %169 : vector<32x32xf32>
    %171 = tpu.iota {dimensions = array<i32: 0>} : vector<32x1xi32>
    %cst_47 = arith.constant 0.000000e+00 : f32
    %172 = vector.broadcast %cst_47 : f32 to vector<32x1xf32>
    %c0_i32_48 = arith.constant 0 : i32
    %173 = vector.broadcast %c0_i32_48 : i32 to vector<32x1xi32>
    %174 = arith.cmpi sge, %171, %173 : vector<32x1xi32>
    %c16_i32_49 = arith.constant 16 : i32
    %175 = vector.broadcast %c16_i32_49 : i32 to vector<32x1xi32>
    %176 = arith.cmpi slt, %171, %175 : vector<32x1xi32>
    %177 = arith.andi %174, %176 : vector<32x1xi1>
    %178 = vector.shape_cast %129 : vector<1x1xf32> to vector<1x1xf32>
    %179 = vector.broadcast %178 : vector<1x1xf32> to vector<32x1xf32>
    %180 = arith.select %177, %179, %172 : vector<32x1xi1>, vector<32x1xf32>
    %c16_i32_50 = arith.constant 16 : i32
    %181 = vector.broadcast %c16_i32_50 : i32 to vector<32x1xi32>
    %182 = arith.cmpi sge, %171, %181 : vector<32x1xi32>
    %c32_i32_51 = arith.constant 32 : i32
    %183 = vector.broadcast %c32_i32_51 : i32 to vector<32x1xi32>
    %184 = arith.cmpi slt, %171, %183 : vector<32x1xi32>
    %185 = arith.andi %182, %184 : vector<32x1xi1>
    %186 = vector.shape_cast %150 : vector<1x1xf32> to vector<1x1xf32>
    %187 = vector.broadcast %186 : vector<1x1xf32> to vector<32x1xf32>
    %188 = arith.select %185, %187, %180 : vector<32x1xi1>, vector<32x1xf32>
    %189 = vector.broadcast %188 : vector<32x1xf32> to vector<32x32xf32>
    %190 = arith.mulf %170, %189 : vector<32x32xf32>
    %c1_52 = arith.constant 1 : index
    %c0_53 = arith.constant 0 : index
    %c0_54 = arith.constant 0 : index
    %191 = vector.load %arg3[%c1_52, %c0_53, %c0_54] : memref<3x32x32xbf16, #tpu.memory_space<vmem>>, vector<1x32x32xbf16>
    %192 = vector.shape_cast %191 : vector<1x32x32xbf16> to vector<32x32xbf16>
    %193 = arith.truncf %190 : vector<32x32xf32> to vector<32x32xbf16>
    %cst_55 = arith.constant dense<0.000000e+00> : vector<32x32xf32>
    %194 = tpu.matmul %193, %192, %cst_55 {dimension_numbers = #tpu.dot_dimension_numbers<[1], [0], [0], [1], [0, 0, 1, 1], [], []>} : vector<32x32xbf16>, vector<32x32xbf16>, vector<32x32xf32> -> vector<32x32xf32>
    %cst_56 = arith.constant 5.000000e-01 : f32
    %195 = vector.broadcast %cst_56 : f32 to vector<32x32xf32>
    %196 = arith.mulf %195, %194 : vector<32x32xf32>
    %cst_57 = arith.constant 4.471500e-02 : f32
    %197 = vector.broadcast %cst_57 : f32 to vector<32x32xf32>
    %198 = arith.mulf %197, %194 : vector<32x32xf32>
    %199 = arith.mulf %198, %194 : vector<32x32xf32>
    %200 = arith.mulf %199, %194 : vector<32x32xf32>
    %201 = arith.addf %194, %200 : vector<32x32xf32>
    %cst_58 = arith.constant 0.797884583 : f32
    %202 = vector.broadcast %cst_58 : f32 to vector<32x32xf32>
    %203 = arith.mulf %202, %201 : vector<32x32xf32>
    %204 = math.tanh %203 : vector<32x32xf32>
    %cst_59 = arith.constant 1.000000e+00 : f32
    %205 = vector.broadcast %cst_59 : f32 to vector<32x32xf32>
    %206 = arith.addf %205, %204 : vector<32x32xf32>
    %207 = arith.mulf %196, %206 : vector<32x32xf32>
    %208 = arith.addf %0, %103 : vector<32x32xf32>
    %209 = arith.addf %208, %207 : vector<32x32xf32>
    %c2 = arith.constant 2 : index
    %c0_60 = arith.constant 0 : index
    %c0_61 = arith.constant 0 : index
    %210 = vector.load %arg2[%c2, %c0_60, %c0_61] : memref<3x32x32xbf16, #tpu.memory_space<vmem>>, vector<1x32x32xbf16>
    %211 = vector.shape_cast %210 : vector<1x32x32xbf16> to vector<32x32xbf16>
    %212 = arith.truncf %209 : vector<32x32xf32> to vector<32x32xbf16>
    %cst_62 = arith.constant dense<0.000000e+00> : vector<32x32xf32>
    %213 = tpu.matmul %212, %211, %cst_62 {dimension_numbers = #tpu.dot_dimension_numbers<[1], [0], [0], [1], [0, 0, 1, 1], [], []>} : vector<32x32xbf16>, vector<32x32xbf16>, vector<32x32xf32> -> vector<32x32xf32>
    %214 = vector.extract_strided_slice %213 {offsets = [0, 0], sizes = [16, 32], strides = [1, 1]} : vector<32x32xf32> to vector<16x32xf32>
    %215 = vector.shape_cast %214 : vector<16x32xf32> to vector<1x16x32xf32>
    %cst_63 = arith.constant dense<0.000000e+00> : vector<1xf32>
    %216 = vector.multi_reduction <add>, %215, %cst_63 [1, 2] : vector<1x16x32xf32> to vector<1xf32>
    %217 = vector.shape_cast %216 : vector<1xf32> to vector<1x1x1xf32>
    %218 = vector.extract %217[0, 0, 0] : f32 from vector<1x1x1xf32>
    %219 = vector.broadcast %218 : f32 to vector<1x1xf32>
    %cst_64 = arith.constant 5.120000e+02 : f32
    %220 = vector.broadcast %cst_64 : f32 to vector<1x1xf32>
    %221 = arith.divf %219, %220 : vector<1x1xf32>
    %222 = vector.broadcast %221 : vector<1x1xf32> to vector<16x32xf32>
    %223 = arith.subf %214, %222 : vector<16x32xf32>
    %224 = arith.mulf %223, %223 : vector<16x32xf32>
    %225 = vector.shape_cast %224 : vector<16x32xf32> to vector<1x16x32xf32>
    %cst_65 = arith.constant dense<0.000000e+00> : vector<1xf32>
    %226 = vector.multi_reduction <add>, %225, %cst_65 [1, 2] : vector<1x16x32xf32> to vector<1xf32>
    %227 = vector.shape_cast %226 : vector<1xf32> to vector<1x1x1xf32>
    %228 = vector.extract %227[0, 0, 0] : f32 from vector<1x1x1xf32>
    %229 = vector.broadcast %228 : f32 to vector<1x1xf32>
    %cst_66 = arith.constant 5.120000e+02 : f32
    %230 = vector.broadcast %cst_66 : f32 to vector<1x1xf32>
    %231 = arith.divf %229, %230 : vector<1x1xf32>
    %cst_67 = arith.constant 9.99999974E-6 : f32
    %232 = vector.broadcast %cst_67 : f32 to vector<1x1xf32>
    %233 = arith.addf %231, %232 : vector<1x1xf32>
    %234 = math.rsqrt %233 : vector<1x1xf32>
    %235 = vector.extract_strided_slice %213 {offsets = [16, 0], sizes = [16, 32], strides = [1, 1]} : vector<32x32xf32> to vector<16x32xf32>
    %236 = vector.shape_cast %235 : vector<16x32xf32> to vector<1x16x32xf32>
    %cst_68 = arith.constant dense<0.000000e+00> : vector<1xf32>
    %237 = vector.multi_reduction <add>, %236, %cst_68 [1, 2] : vector<1x16x32xf32> to vector<1xf32>
    %238 = vector.shape_cast %237 : vector<1xf32> to vector<1x1x1xf32>
    %239 = vector.extract %238[0, 0, 0] : f32 from vector<1x1x1xf32>
    %240 = vector.broadcast %239 : f32 to vector<1x1xf32>
    %cst_69 = arith.constant 5.120000e+02 : f32
    %241 = vector.broadcast %cst_69 : f32 to vector<1x1xf32>
    %242 = arith.divf %240, %241 : vector<1x1xf32>
    %243 = vector.broadcast %242 : vector<1x1xf32> to vector<16x32xf32>
    %244 = arith.subf %235, %243 : vector<16x32xf32>
    %245 = arith.mulf %244, %244 : vector<16x32xf32>
    %246 = vector.shape_cast %245 : vector<16x32xf32> to vector<1x16x32xf32>
    %cst_70 = arith.constant dense<0.000000e+00> : vector<1xf32>
    %247 = vector.multi_reduction <add>, %246, %cst_70 [1, 2] : vector<1x16x32xf32> to vector<1xf32>
    %248 = vector.shape_cast %247 : vector<1xf32> to vector<1x1x1xf32>
    %249 = vector.extract %248[0, 0, 0] : f32 from vector<1x1x1xf32>
    %250 = vector.broadcast %249 : f32 to vector<1x1xf32>
    %cst_71 = arith.constant 5.120000e+02 : f32
    %251 = vector.broadcast %cst_71 : f32 to vector<1x1xf32>
    %252 = arith.divf %250, %251 : vector<1x1xf32>
    %cst_72 = arith.constant 9.99999974E-6 : f32
    %253 = vector.broadcast %cst_72 : f32 to vector<1x1xf32>
    %254 = arith.addf %252, %253 : vector<1x1xf32>
    %255 = math.rsqrt %254 : vector<1x1xf32>
    %256 = tpu.iota {dimensions = array<i32: 0>} : vector<32x1xi32>
    %cst_73 = arith.constant 0.000000e+00 : f32
    %257 = vector.broadcast %cst_73 : f32 to vector<32x1xf32>
    %c0_i32_74 = arith.constant 0 : i32
    %258 = vector.broadcast %c0_i32_74 : i32 to vector<32x1xi32>
    %259 = arith.cmpi sge, %256, %258 : vector<32x1xi32>
    %c16_i32_75 = arith.constant 16 : i32
    %260 = vector.broadcast %c16_i32_75 : i32 to vector<32x1xi32>
    %261 = arith.cmpi slt, %256, %260 : vector<32x1xi32>
    %262 = arith.andi %259, %261 : vector<32x1xi1>
    %263 = vector.shape_cast %221 : vector<1x1xf32> to vector<1x1xf32>
    %264 = vector.broadcast %263 : vector<1x1xf32> to vector<32x1xf32>
    %265 = arith.select %262, %264, %257 : vector<32x1xi1>, vector<32x1xf32>
    %c16_i32_76 = arith.constant 16 : i32
    %266 = vector.broadcast %c16_i32_76 : i32 to vector<32x1xi32>
    %267 = arith.cmpi sge, %256, %266 : vector<32x1xi32>
    %c32_i32_77 = arith.constant 32 : i32
    %268 = vector.broadcast %c32_i32_77 : i32 to vector<32x1xi32>
    %269 = arith.cmpi slt, %256, %268 : vector<32x1xi32>
    %270 = arith.andi %267, %269 : vector<32x1xi1>
    %271 = vector.shape_cast %242 : vector<1x1xf32> to vector<1x1xf32>
    %272 = vector.broadcast %271 : vector<1x1xf32> to vector<32x1xf32>
    %273 = arith.select %270, %272, %265 : vector<32x1xi1>, vector<32x1xf32>
    %274 = vector.broadcast %273 : vector<32x1xf32> to vector<32x32xf32>
    %275 = arith.subf %213, %274 : vector<32x32xf32>
    %276 = tpu.iota {dimensions = array<i32: 0>} : vector<32x1xi32>
    %cst_78 = arith.constant 0.000000e+00 : f32
    %277 = vector.broadcast %cst_78 : f32 to vector<32x1xf32>
    %c0_i32_79 = arith.constant 0 : i32
    %278 = vector.broadcast %c0_i32_79 : i32 to vector<32x1xi32>
    %279 = arith.cmpi sge, %276, %278 : vector<32x1xi32>
    %c16_i32_80 = arith.constant 16 : i32
    %280 = vector.broadcast %c16_i32_80 : i32 to vector<32x1xi32>
    %281 = arith.cmpi slt, %276, %280 : vector<32x1xi32>
    %282 = arith.andi %279, %281 : vector<32x1xi1>
    %283 = vector.shape_cast %234 : vector<1x1xf32> to vector<1x1xf32>
    %284 = vector.broadcast %283 : vector<1x1xf32> to vector<32x1xf32>
    %285 = arith.select %282, %284, %277 : vector<32x1xi1>, vector<32x1xf32>
    %c16_i32_81 = arith.constant 16 : i32
    %286 = vector.broadcast %c16_i32_81 : i32 to vector<32x1xi32>
    %287 = arith.cmpi sge, %276, %286 : vector<32x1xi32>
    %c32_i32_82 = arith.constant 32 : i32
    %288 = vector.broadcast %c32_i32_82 : i32 to vector<32x1xi32>
    %289 = arith.cmpi slt, %276, %288 : vector<32x1xi32>
    %290 = arith.andi %287, %289 : vector<32x1xi1>
    %291 = vector.shape_cast %255 : vector<1x1xf32> to vector<1x1xf32>
    %292 = vector.broadcast %291 : vector<1x1xf32> to vector<32x1xf32>
    %293 = arith.select %290, %292, %285 : vector<32x1xi1>, vector<32x1xf32>
    %294 = vector.broadcast %293 : vector<32x1xf32> to vector<32x32xf32>
    %295 = arith.mulf %275, %294 : vector<32x32xf32>
    %c2_83 = arith.constant 2 : index
    %c0_84 = arith.constant 0 : index
    %c0_85 = arith.constant 0 : index
    %296 = vector.load %arg3[%c2_83, %c0_84, %c0_85] : memref<3x32x32xbf16, #tpu.memory_space<vmem>>, vector<1x32x32xbf16>
    %297 = vector.shape_cast %296 : vector<1x32x32xbf16> to vector<32x32xbf16>
    %298 = arith.truncf %295 : vector<32x32xf32> to vector<32x32xbf16>
    %cst_86 = arith.constant dense<0.000000e+00> : vector<32x32xf32>
    %299 = tpu.matmul %298, %297, %cst_86 {dimension_numbers = #tpu.dot_dimension_numbers<[1], [0], [0], [1], [0, 0, 1, 1], [], []>} : vector<32x32xbf16>, vector<32x32xbf16>, vector<32x32xf32> -> vector<32x32xf32>
    %cst_87 = arith.constant 5.000000e-01 : f32
    %300 = vector.broadcast %cst_87 : f32 to vector<32x32xf32>
    %301 = arith.mulf %300, %299 : vector<32x32xf32>
    %cst_88 = arith.constant 4.471500e-02 : f32
    %302 = vector.broadcast %cst_88 : f32 to vector<32x32xf32>
    %303 = arith.mulf %302, %299 : vector<32x32xf32>
    %304 = arith.mulf %303, %299 : vector<32x32xf32>
    %305 = arith.mulf %304, %299 : vector<32x32xf32>
    %306 = arith.addf %299, %305 : vector<32x32xf32>
    %cst_89 = arith.constant 0.797884583 : f32
    %307 = vector.broadcast %cst_89 : f32 to vector<32x32xf32>
    %308 = arith.mulf %307, %306 : vector<32x32xf32>
    %309 = math.tanh %308 : vector<32x32xf32>
    %cst_90 = arith.constant 1.000000e+00 : f32
    %310 = vector.broadcast %cst_90 : f32 to vector<32x32xf32>
    %311 = arith.addf %310, %309 : vector<32x32xf32>
    %312 = arith.mulf %301, %311 : vector<32x32xf32>
    %c0_91 = arith.constant 0 : index
    %c0_92 = arith.constant 0 : index
    %c0_93 = arith.constant 0 : index
    %313 = vector.load %arg4[%c0_91, %c0_92, %c0_93] : memref<3x32x32xbf16, #tpu.memory_space<vmem>>, vector<1x32x32xbf16>
    %314 = vector.shape_cast %313 : vector<1x32x32xbf16> to vector<32x32xbf16>
    %315 = arith.truncf %103 : vector<32x32xf32> to vector<32x32xbf16>
    %cst_94 = arith.constant dense<0.000000e+00> : vector<32x32xf32>
    %316 = tpu.matmul %315, %314, %cst_94 {dimension_numbers = #tpu.dot_dimension_numbers<[1], [0], [0], [1], [0, 0, 1, 1], [], []>} : vector<32x32xbf16>, vector<32x32xbf16>, vector<32x32xf32> -> vector<32x32xf32>
    %c1_95 = arith.constant 1 : index
    %c0_96 = arith.constant 0 : index
    %c0_97 = arith.constant 0 : index
    %317 = vector.load %arg4[%c1_95, %c0_96, %c0_97] : memref<3x32x32xbf16, #tpu.memory_space<vmem>>, vector<1x32x32xbf16>
    %318 = vector.shape_cast %317 : vector<1x32x32xbf16> to vector<32x32xbf16>
    %319 = arith.truncf %207 : vector<32x32xf32> to vector<32x32xbf16>
    %cst_98 = arith.constant dense<0.000000e+00> : vector<32x32xf32>
    %320 = tpu.matmul %319, %318, %cst_98 {dimension_numbers = #tpu.dot_dimension_numbers<[1], [0], [0], [1], [0, 0, 1, 1], [], []>} : vector<32x32xbf16>, vector<32x32xbf16>, vector<32x32xf32> -> vector<32x32xf32>
    %321 = arith.addf %316, %320 : vector<32x32xf32>
    %c2_99 = arith.constant 2 : index
    %c0_100 = arith.constant 0 : index
    %c0_101 = arith.constant 0 : index
    %322 = vector.load %arg4[%c2_99, %c0_100, %c0_101] : memref<3x32x32xbf16, #tpu.memory_space<vmem>>, vector<1x32x32xbf16>
    %323 = vector.shape_cast %322 : vector<1x32x32xbf16> to vector<32x32xbf16>
    %324 = arith.truncf %312 : vector<32x32xf32> to vector<32x32xbf16>
    %cst_102 = arith.constant dense<0.000000e+00> : vector<32x32xf32>
    %325 = tpu.matmul %324, %323, %cst_102 {dimension_numbers = #tpu.dot_dimension_numbers<[1], [0], [0], [1], [0, 0, 1, 1], [], []>} : vector<32x32xbf16>, vector<32x32xbf16>, vector<32x32xf32> -> vector<32x32xf32>
    %326 = arith.addf %321, %325 : vector<32x32xf32>
    %327 = vector.extract_strided_slice %103 {offsets = [0, 0], sizes = [16, 32], strides = [1, 1]} : vector<32x32xf32> to vector<16x32xf32>
    %328 = vector.extract_strided_slice %207 {offsets = [0, 0], sizes = [16, 32], strides = [1, 1]} : vector<32x32xf32> to vector<16x32xf32>
    %329 = vector.extract_strided_slice %312 {offsets = [0, 0], sizes = [16, 32], strides = [1, 1]} : vector<32x32xf32> to vector<16x32xf32>
    %330 = vector.shape_cast %327 : vector<16x32xf32> to vector<1x16x32xf32>
    %cst_103 = arith.constant dense<0.000000e+00> : vector<1xf32>
    %331 = vector.multi_reduction <add>, %330, %cst_103 [1, 2] : vector<1x16x32xf32> to vector<1xf32>
    %332 = vector.shape_cast %331 : vector<1xf32> to vector<1x1x1xf32>
    %333 = vector.extract %332[0, 0, 0] : f32 from vector<1x1x1xf32>
    %334 = vector.broadcast %333 : f32 to vector<1x1xf32>
    %cst_104 = arith.constant 5.120000e+02 : f32
    %335 = vector.broadcast %cst_104 : f32 to vector<1x1xf32>
    %336 = arith.divf %334, %335 : vector<1x1xf32>
    %337 = vector.shape_cast %328 : vector<16x32xf32> to vector<1x16x32xf32>
    %cst_105 = arith.constant dense<0.000000e+00> : vector<1xf32>
    %338 = vector.multi_reduction <add>, %337, %cst_105 [1, 2] : vector<1x16x32xf32> to vector<1xf32>
    %339 = vector.shape_cast %338 : vector<1xf32> to vector<1x1x1xf32>
    %340 = vector.extract %339[0, 0, 0] : f32 from vector<1x1x1xf32>
    %341 = vector.broadcast %340 : f32 to vector<1x1xf32>
    %cst_106 = arith.constant 5.120000e+02 : f32
    %342 = vector.broadcast %cst_106 : f32 to vector<1x1xf32>
    %343 = arith.divf %341, %342 : vector<1x1xf32>
    %344 = arith.addf %336, %343 : vector<1x1xf32>
    %345 = vector.shape_cast %329 : vector<16x32xf32> to vector<1x16x32xf32>
    %cst_107 = arith.constant dense<0.000000e+00> : vector<1xf32>
    %346 = vector.multi_reduction <add>, %345, %cst_107 [1, 2] : vector<1x16x32xf32> to vector<1xf32>
    %347 = vector.shape_cast %346 : vector<1xf32> to vector<1x1x1xf32>
    %348 = vector.extract %347[0, 0, 0] : f32 from vector<1x1x1xf32>
    %349 = vector.broadcast %348 : f32 to vector<1x1xf32>
    %cst_108 = arith.constant 5.120000e+02 : f32
    %350 = vector.broadcast %cst_108 : f32 to vector<1x1xf32>
    %351 = arith.divf %349, %350 : vector<1x1xf32>
    %352 = arith.addf %344, %351 : vector<1x1xf32>
    %cst_109 = arith.constant 3.000000e+00 : f32
    %353 = vector.broadcast %cst_109 : f32 to vector<1x1xf32>
    %354 = arith.divf %352, %353 : vector<1x1xf32>
    %355 = arith.mulf %327, %327 : vector<16x32xf32>
    %356 = vector.shape_cast %355 : vector<16x32xf32> to vector<1x16x32xf32>
    %cst_110 = arith.constant dense<0.000000e+00> : vector<1xf32>
    %357 = vector.multi_reduction <add>, %356, %cst_110 [1, 2] : vector<1x16x32xf32> to vector<1xf32>
    %358 = vector.shape_cast %357 : vector<1xf32> to vector<1x1x1xf32>
    %359 = vector.extract %358[0, 0, 0] : f32 from vector<1x1x1xf32>
    %360 = vector.broadcast %359 : f32 to vector<1x1xf32>
    %cst_111 = arith.constant 5.120000e+02 : f32
    %361 = vector.broadcast %cst_111 : f32 to vector<1x1xf32>
    %362 = arith.divf %360, %361 : vector<1x1xf32>
    %363 = arith.mulf %328, %328 : vector<16x32xf32>
    %364 = vector.shape_cast %363 : vector<16x32xf32> to vector<1x16x32xf32>
    %cst_112 = arith.constant dense<0.000000e+00> : vector<1xf32>
    %365 = vector.multi_reduction <add>, %364, %cst_112 [1, 2] : vector<1x16x32xf32> to vector<1xf32>
    %366 = vector.shape_cast %365 : vector<1xf32> to vector<1x1x1xf32>
    %367 = vector.extract %366[0, 0, 0] : f32 from vector<1x1x1xf32>
    %368 = vector.broadcast %367 : f32 to vector<1x1xf32>
    %cst_113 = arith.constant 5.120000e+02 : f32
    %369 = vector.broadcast %cst_113 : f32 to vector<1x1xf32>
    %370 = arith.divf %368, %369 : vector<1x1xf32>
    %371 = arith.addf %362, %370 : vector<1x1xf32>
    %372 = arith.mulf %329, %329 : vector<16x32xf32>
    %373 = vector.shape_cast %372 : vector<16x32xf32> to vector<1x16x32xf32>
    %cst_114 = arith.constant dense<0.000000e+00> : vector<1xf32>
    %374 = vector.multi_reduction <add>, %373, %cst_114 [1, 2] : vector<1x16x32xf32> to vector<1xf32>
    %375 = vector.shape_cast %374 : vector<1xf32> to vector<1x1x1xf32>
    %376 = vector.extract %375[0, 0, 0] : f32 from vector<1x1x1xf32>
    %377 = vector.broadcast %376 : f32 to vector<1x1xf32>
    %cst_115 = arith.constant 5.120000e+02 : f32
    %378 = vector.broadcast %cst_115 : f32 to vector<1x1xf32>
    %379 = arith.divf %377, %378 : vector<1x1xf32>
    %380 = arith.addf %371, %379 : vector<1x1xf32>
    %cst_116 = arith.constant 3.000000e+00 : f32
    %381 = vector.broadcast %cst_116 : f32 to vector<1x1xf32>
    %382 = arith.divf %380, %381 : vector<1x1xf32>
    %383 = arith.mulf %354, %354 : vector<1x1xf32>
    %384 = arith.subf %382, %383 : vector<1x1xf32>
    %cst_117 = arith.constant 9.99999974E-6 : f32
    %385 = vector.broadcast %cst_117 : f32 to vector<1x1xf32>
    %386 = arith.addf %384, %385 : vector<1x1xf32>
    %387 = math.rsqrt %386 : vector<1x1xf32>
    %388 = vector.extract_strided_slice %103 {offsets = [16, 0], sizes = [16, 32], strides = [1, 1]} : vector<32x32xf32> to vector<16x32xf32>
    %389 = vector.extract_strided_slice %207 {offsets = [16, 0], sizes = [16, 32], strides = [1, 1]} : vector<32x32xf32> to vector<16x32xf32>
    %390 = vector.extract_strided_slice %312 {offsets = [16, 0], sizes = [16, 32], strides = [1, 1]} : vector<32x32xf32> to vector<16x32xf32>
    %391 = vector.shape_cast %388 : vector<16x32xf32> to vector<1x16x32xf32>
    %cst_118 = arith.constant dense<0.000000e+00> : vector<1xf32>
    %392 = vector.multi_reduction <add>, %391, %cst_118 [1, 2] : vector<1x16x32xf32> to vector<1xf32>
    %393 = vector.shape_cast %392 : vector<1xf32> to vector<1x1x1xf32>
    %394 = vector.extract %393[0, 0, 0] : f32 from vector<1x1x1xf32>
    %395 = vector.broadcast %394 : f32 to vector<1x1xf32>
    %cst_119 = arith.constant 5.120000e+02 : f32
    %396 = vector.broadcast %cst_119 : f32 to vector<1x1xf32>
    %397 = arith.divf %395, %396 : vector<1x1xf32>
    %398 = vector.shape_cast %389 : vector<16x32xf32> to vector<1x16x32xf32>
    %cst_120 = arith.constant dense<0.000000e+00> : vector<1xf32>
    %399 = vector.multi_reduction <add>, %398, %cst_120 [1, 2] : vector<1x16x32xf32> to vector<1xf32>
    %400 = vector.shape_cast %399 : vector<1xf32> to vector<1x1x1xf32>
    %401 = vector.extract %400[0, 0, 0] : f32 from vector<1x1x1xf32>
    %402 = vector.broadcast %401 : f32 to vector<1x1xf32>
    %cst_121 = arith.constant 5.120000e+02 : f32
    %403 = vector.broadcast %cst_121 : f32 to vector<1x1xf32>
    %404 = arith.divf %402, %403 : vector<1x1xf32>
    %405 = arith.addf %397, %404 : vector<1x1xf32>
    %406 = vector.shape_cast %390 : vector<16x32xf32> to vector<1x16x32xf32>
    %cst_122 = arith.constant dense<0.000000e+00> : vector<1xf32>
    %407 = vector.multi_reduction <add>, %406, %cst_122 [1, 2] : vector<1x16x32xf32> to vector<1xf32>
    %408 = vector.shape_cast %407 : vector<1xf32> to vector<1x1x1xf32>
    %409 = vector.extract %408[0, 0, 0] : f32 from vector<1x1x1xf32>
    %410 = vector.broadcast %409 : f32 to vector<1x1xf32>
    %cst_123 = arith.constant 5.120000e+02 : f32
    %411 = vector.broadcast %cst_123 : f32 to vector<1x1xf32>
    %412 = arith.divf %410, %411 : vector<1x1xf32>
    %413 = arith.addf %405, %412 : vector<1x1xf32>
    %cst_124 = arith.constant 3.000000e+00 : f32
    %414 = vector.broadcast %cst_124 : f32 to vector<1x1xf32>
    %415 = arith.divf %413, %414 : vector<1x1xf32>
    %416 = arith.mulf %388, %388 : vector<16x32xf32>
    %417 = vector.shape_cast %416 : vector<16x32xf32> to vector<1x16x32xf32>
    %cst_125 = arith.constant dense<0.000000e+00> : vector<1xf32>
    %418 = vector.multi_reduction <add>, %417, %cst_125 [1, 2] : vector<1x16x32xf32> to vector<1xf32>
    %419 = vector.shape_cast %418 : vector<1xf32> to vector<1x1x1xf32>
    %420 = vector.extract %419[0, 0, 0] : f32 from vector<1x1x1xf32>
    %421 = vector.broadcast %420 : f32 to vector<1x1xf32>
    %cst_126 = arith.constant 5.120000e+02 : f32
    %422 = vector.broadcast %cst_126 : f32 to vector<1x1xf32>
    %423 = arith.divf %421, %422 : vector<1x1xf32>
    %424 = arith.mulf %389, %389 : vector<16x32xf32>
    %425 = vector.shape_cast %424 : vector<16x32xf32> to vector<1x16x32xf32>
    %cst_127 = arith.constant dense<0.000000e+00> : vector<1xf32>
    %426 = vector.multi_reduction <add>, %425, %cst_127 [1, 2] : vector<1x16x32xf32> to vector<1xf32>
    %427 = vector.shape_cast %426 : vector<1xf32> to vector<1x1x1xf32>
    %428 = vector.extract %427[0, 0, 0] : f32 from vector<1x1x1xf32>
    %429 = vector.broadcast %428 : f32 to vector<1x1xf32>
    %cst_128 = arith.constant 5.120000e+02 : f32
    %430 = vector.broadcast %cst_128 : f32 to vector<1x1xf32>
    %431 = arith.divf %429, %430 : vector<1x1xf32>
    %432 = arith.addf %423, %431 : vector<1x1xf32>
    %433 = arith.mulf %390, %390 : vector<16x32xf32>
    %434 = vector.shape_cast %433 : vector<16x32xf32> to vector<1x16x32xf32>
    %cst_129 = arith.constant dense<0.000000e+00> : vector<1xf32>
    %435 = vector.multi_reduction <add>, %434, %cst_129 [1, 2] : vector<1x16x32xf32> to vector<1xf32>
    %436 = vector.shape_cast %435 : vector<1xf32> to vector<1x1x1xf32>
    %437 = vector.extract %436[0, 0, 0] : f32 from vector<1x1x1xf32>
    %438 = vector.broadcast %437 : f32 to vector<1x1xf32>
    %cst_130 = arith.constant 5.120000e+02 : f32
    %439 = vector.broadcast %cst_130 : f32 to vector<1x1xf32>
    %440 = arith.divf %438, %439 : vector<1x1xf32>
    %441 = arith.addf %432, %440 : vector<1x1xf32>
    %cst_131 = arith.constant 3.000000e+00 : f32
    %442 = vector.broadcast %cst_131 : f32 to vector<1x1xf32>
    %443 = arith.divf %441, %442 : vector<1x1xf32>
    %444 = arith.mulf %415, %415 : vector<1x1xf32>
    %445 = arith.subf %443, %444 : vector<1x1xf32>
    %cst_132 = arith.constant 9.99999974E-6 : f32
    %446 = vector.broadcast %cst_132 : f32 to vector<1x1xf32>
    %447 = arith.addf %445, %446 : vector<1x1xf32>
    %448 = math.rsqrt %447 : vector<1x1xf32>
    %449 = tpu.iota {dimensions = array<i32: 0>} : vector<32x1xi32>
    %cst_133 = arith.constant 0.000000e+00 : f32
    %450 = vector.broadcast %cst_133 : f32 to vector<32x1xf32>
    %c0_i32_134 = arith.constant 0 : i32
    %451 = vector.broadcast %c0_i32_134 : i32 to vector<32x1xi32>
    %452 = arith.cmpi sge, %449, %451 : vector<32x1xi32>
    %c16_i32_135 = arith.constant 16 : i32
    %453 = vector.broadcast %c16_i32_135 : i32 to vector<32x1xi32>
    %454 = arith.cmpi slt, %449, %453 : vector<32x1xi32>
    %455 = arith.andi %452, %454 : vector<32x1xi1>
    %456 = vector.shape_cast %354 : vector<1x1xf32> to vector<1x1xf32>
    %457 = vector.broadcast %456 : vector<1x1xf32> to vector<32x1xf32>
    %458 = arith.select %455, %457, %450 : vector<32x1xi1>, vector<32x1xf32>
    %c16_i32_136 = arith.constant 16 : i32
    %459 = vector.broadcast %c16_i32_136 : i32 to vector<32x1xi32>
    %460 = arith.cmpi sge, %449, %459 : vector<32x1xi32>
    %c32_i32_137 = arith.constant 32 : i32
    %461 = vector.broadcast %c32_i32_137 : i32 to vector<32x1xi32>
    %462 = arith.cmpi slt, %449, %461 : vector<32x1xi32>
    %463 = arith.andi %460, %462 : vector<32x1xi1>
    %464 = vector.shape_cast %415 : vector<1x1xf32> to vector<1x1xf32>
    %465 = vector.broadcast %464 : vector<1x1xf32> to vector<32x1xf32>
    %466 = arith.select %463, %465, %458 : vector<32x1xi1>, vector<32x1xf32>
    %467 = tpu.iota {dimensions = array<i32: 0>} : vector<32x1xi32>
    %cst_138 = arith.constant 0.000000e+00 : f32
    %468 = vector.broadcast %cst_138 : f32 to vector<32x1xf32>
    %c0_i32_139 = arith.constant 0 : i32
    %469 = vector.broadcast %c0_i32_139 : i32 to vector<32x1xi32>
    %470 = arith.cmpi sge, %467, %469 : vector<32x1xi32>
    %c16_i32_140 = arith.constant 16 : i32
    %471 = vector.broadcast %c16_i32_140 : i32 to vector<32x1xi32>
    %472 = arith.cmpi slt, %467, %471 : vector<32x1xi32>
    %473 = arith.andi %470, %472 : vector<32x1xi1>
    %474 = vector.shape_cast %387 : vector<1x1xf32> to vector<1x1xf32>
    %475 = vector.broadcast %474 : vector<1x1xf32> to vector<32x1xf32>
    %476 = arith.select %473, %475, %468 : vector<32x1xi1>, vector<32x1xf32>
    %c16_i32_141 = arith.constant 16 : i32
    %477 = vector.broadcast %c16_i32_141 : i32 to vector<32x1xi32>
    %478 = arith.cmpi sge, %467, %477 : vector<32x1xi32>
    %c32_i32_142 = arith.constant 32 : i32
    %479 = vector.broadcast %c32_i32_142 : i32 to vector<32x1xi32>
    %480 = arith.cmpi slt, %467, %479 : vector<32x1xi32>
    %481 = arith.andi %478, %480 : vector<32x1xi1>
    %482 = vector.shape_cast %448 : vector<1x1xf32> to vector<1x1xf32>
    %483 = vector.broadcast %482 : vector<1x1xf32> to vector<32x1xf32>
    %484 = arith.select %481, %483, %476 : vector<32x1xi1>, vector<32x1xf32>
    %c0_143 = arith.constant 0 : index
    %c0_144 = arith.constant 0 : index
    %485 = vector.load %arg5[%c0_143, %c0_144] : memref<1x32xf32, #tpu.memory_space<vmem>>, vector<1x32xf32>
    %486 = vector.broadcast %466 : vector<32x1xf32> to vector<32x32xf32>
    %487 = vector.broadcast %485 : vector<1x32xf32> to vector<32x32xf32>
    %488 = arith.mulf %486, %487 : vector<32x32xf32>
    %489 = arith.subf %326, %488 : vector<32x32xf32>
    %490 = vector.broadcast %484 : vector<32x1xf32> to vector<32x32xf32>
    %491 = arith.mulf %489, %490 : vector<32x32xf32>
    %c0_145 = arith.constant 0 : index
    %c0_146 = arith.constant 0 : index
    %492 = vector.load %arg6[%c0_145, %c0_146] : memref<32x16xbf16, #tpu.memory_space<vmem>>, vector<32x16xbf16>
    %493 = arith.truncf %491 : vector<32x32xf32> to vector<32x32xbf16>
    %cst_147 = arith.constant dense<0.000000e+00> : vector<32x16xf32>
    %494 = tpu.matmul %493, %492, %cst_147 {dimension_numbers = #tpu.dot_dimension_numbers<[1], [0], [0], [1], [0, 0, 1, 1], [], []>} : vector<32x32xbf16>, vector<32x16xbf16>, vector<32x16xf32> -> vector<32x16xf32>
    %495 = vector.extract_strided_slice %494 {offsets = [0, 0], sizes = [16, 16], strides = [1, 1]} : vector<32x16xf32> to vector<16x16xf32>
    %496 = vector.shape_cast %495 : vector<16x16xf32> to vector<1x16x16xf32>
    %cst_148 = arith.constant dense<0.000000e+00> : vector<1xf32>
    %497 = vector.multi_reduction <add>, %496, %cst_148 [1, 2] : vector<1x16x16xf32> to vector<1xf32>
    %498 = vector.shape_cast %497 : vector<1xf32> to vector<1x1x1xf32>
    %499 = vector.extract %498[0, 0, 0] : f32 from vector<1x1x1xf32>
    %500 = vector.broadcast %499 : f32 to vector<1x1xf32>
    %cst_149 = arith.constant 2.560000e+02 : f32
    %501 = vector.broadcast %cst_149 : f32 to vector<1x1xf32>
    %502 = arith.divf %500, %501 : vector<1x1xf32>
    %503 = vector.broadcast %502 : vector<1x1xf32> to vector<16x16xf32>
    %504 = arith.subf %495, %503 : vector<16x16xf32>
    %505 = arith.mulf %504, %504 : vector<16x16xf32>
    %506 = vector.shape_cast %505 : vector<16x16xf32> to vector<1x16x16xf32>
    %cst_150 = arith.constant dense<0.000000e+00> : vector<1xf32>
    %507 = vector.multi_reduction <add>, %506, %cst_150 [1, 2] : vector<1x16x16xf32> to vector<1xf32>
    %508 = vector.shape_cast %507 : vector<1xf32> to vector<1x1x1xf32>
    %509 = vector.extract %508[0, 0, 0] : f32 from vector<1x1x1xf32>
    %510 = vector.broadcast %509 : f32 to vector<1x1xf32>
    %cst_151 = arith.constant 2.560000e+02 : f32
    %511 = vector.broadcast %cst_151 : f32 to vector<1x1xf32>
    %512 = arith.divf %510, %511 : vector<1x1xf32>
    %cst_152 = arith.constant 9.99999974E-6 : f32
    %513 = vector.broadcast %cst_152 : f32 to vector<1x1xf32>
    %514 = arith.addf %512, %513 : vector<1x1xf32>
    %515 = math.rsqrt %514 : vector<1x1xf32>
    %516 = vector.extract_strided_slice %494 {offsets = [16, 0], sizes = [16, 16], strides = [1, 1]} : vector<32x16xf32> to vector<16x16xf32>
    %517 = vector.shape_cast %516 : vector<16x16xf32> to vector<1x16x16xf32>
    %cst_153 = arith.constant dense<0.000000e+00> : vector<1xf32>
    %518 = vector.multi_reduction <add>, %517, %cst_153 [1, 2] : vector<1x16x16xf32> to vector<1xf32>
    %519 = vector.shape_cast %518 : vector<1xf32> to vector<1x1x1xf32>
    %520 = vector.extract %519[0, 0, 0] : f32 from vector<1x1x1xf32>
    %521 = vector.broadcast %520 : f32 to vector<1x1xf32>
    %cst_154 = arith.constant 2.560000e+02 : f32
    %522 = vector.broadcast %cst_154 : f32 to vector<1x1xf32>
    %523 = arith.divf %521, %522 : vector<1x1xf32>
    %524 = vector.broadcast %523 : vector<1x1xf32> to vector<16x16xf32>
    %525 = arith.subf %516, %524 : vector<16x16xf32>
    %526 = arith.mulf %525, %525 : vector<16x16xf32>
    %527 = vector.shape_cast %526 : vector<16x16xf32> to vector<1x16x16xf32>
    %cst_155 = arith.constant dense<0.000000e+00> : vector<1xf32>
    %528 = vector.multi_reduction <add>, %527, %cst_155 [1, 2] : vector<1x16x16xf32> to vector<1xf32>
    %529 = vector.shape_cast %528 : vector<1xf32> to vector<1x1x1xf32>
    %530 = vector.extract %529[0, 0, 0] : f32 from vector<1x1x1xf32>
    %531 = vector.broadcast %530 : f32 to vector<1x1xf32>
    %cst_156 = arith.constant 2.560000e+02 : f32
    %532 = vector.broadcast %cst_156 : f32 to vector<1x1xf32>
    %533 = arith.divf %531, %532 : vector<1x1xf32>
    %cst_157 = arith.constant 9.99999974E-6 : f32
    %534 = vector.broadcast %cst_157 : f32 to vector<1x1xf32>
    %535 = arith.addf %533, %534 : vector<1x1xf32>
    %536 = math.rsqrt %535 : vector<1x1xf32>
    %537 = tpu.iota {dimensions = array<i32: 0>} : vector<32x1xi32>
    %cst_158 = arith.constant 0.000000e+00 : f32
    %538 = vector.broadcast %cst_158 : f32 to vector<32x1xf32>
    %c0_i32_159 = arith.constant 0 : i32
    %539 = vector.broadcast %c0_i32_159 : i32 to vector<32x1xi32>
    %540 = arith.cmpi sge, %537, %539 : vector<32x1xi32>
    %c16_i32_160 = arith.constant 16 : i32
    %541 = vector.broadcast %c16_i32_160 : i32 to vector<32x1xi32>
    %542 = arith.cmpi slt, %537, %541 : vector<32x1xi32>
    %543 = arith.andi %540, %542 : vector<32x1xi1>
    %544 = vector.shape_cast %502 : vector<1x1xf32> to vector<1x1xf32>
    %545 = vector.broadcast %544 : vector<1x1xf32> to vector<32x1xf32>
    %546 = arith.select %543, %545, %538 : vector<32x1xi1>, vector<32x1xf32>
    %c16_i32_161 = arith.constant 16 : i32
    %547 = vector.broadcast %c16_i32_161 : i32 to vector<32x1xi32>
    %548 = arith.cmpi sge, %537, %547 : vector<32x1xi32>
    %c32_i32_162 = arith.constant 32 : i32
    %549 = vector.broadcast %c32_i32_162 : i32 to vector<32x1xi32>
    %550 = arith.cmpi slt, %537, %549 : vector<32x1xi32>
    %551 = arith.andi %548, %550 : vector<32x1xi1>
    %552 = vector.shape_cast %523 : vector<1x1xf32> to vector<1x1xf32>
    %553 = vector.broadcast %552 : vector<1x1xf32> to vector<32x1xf32>
    %554 = arith.select %551, %553, %546 : vector<32x1xi1>, vector<32x1xf32>
    %555 = vector.broadcast %554 : vector<32x1xf32> to vector<32x16xf32>
    %556 = arith.subf %494, %555 : vector<32x16xf32>
    %557 = tpu.iota {dimensions = array<i32: 0>} : vector<32x1xi32>
    %cst_163 = arith.constant 0.000000e+00 : f32
    %558 = vector.broadcast %cst_163 : f32 to vector<32x1xf32>
    %c0_i32_164 = arith.constant 0 : i32
    %559 = vector.broadcast %c0_i32_164 : i32 to vector<32x1xi32>
    %560 = arith.cmpi sge, %557, %559 : vector<32x1xi32>
    %c16_i32_165 = arith.constant 16 : i32
    %561 = vector.broadcast %c16_i32_165 : i32 to vector<32x1xi32>
    %562 = arith.cmpi slt, %557, %561 : vector<32x1xi32>
    %563 = arith.andi %560, %562 : vector<32x1xi1>
    %564 = vector.shape_cast %515 : vector<1x1xf32> to vector<1x1xf32>
    %565 = vector.broadcast %564 : vector<1x1xf32> to vector<32x1xf32>
    %566 = arith.select %563, %565, %558 : vector<32x1xi1>, vector<32x1xf32>
    %c16_i32_166 = arith.constant 16 : i32
    %567 = vector.broadcast %c16_i32_166 : i32 to vector<32x1xi32>
    %568 = arith.cmpi sge, %557, %567 : vector<32x1xi32>
    %c32_i32_167 = arith.constant 32 : i32
    %569 = vector.broadcast %c32_i32_167 : i32 to vector<32x1xi32>
    %570 = arith.cmpi slt, %557, %569 : vector<32x1xi32>
    %571 = arith.andi %568, %570 : vector<32x1xi1>
    %572 = vector.shape_cast %536 : vector<1x1xf32> to vector<1x1xf32>
    %573 = vector.broadcast %572 : vector<1x1xf32> to vector<32x1xf32>
    %574 = arith.select %571, %573, %566 : vector<32x1xi1>, vector<32x1xf32>
    %575 = vector.broadcast %574 : vector<32x1xf32> to vector<32x16xf32>
    %576 = arith.mulf %556, %575 : vector<32x16xf32>
    %c0_168 = arith.constant 0 : index
    %c0_169 = arith.constant 0 : index
    %577 = vector.load %arg7[%c0_168, %c0_169] : memref<1x16xf32, #tpu.memory_space<vmem>>, vector<1x16xf32>
    %578 = vector.broadcast %577 : vector<1x16xf32> to vector<32x16xf32>
    %579 = arith.mulf %576, %578 : vector<32x16xf32>
    %cst_170 = arith.constant dense<0.000000e+00> : vector<32xf32>
    %580 = vector.multi_reduction <add>, %579, %cst_170 [1] : vector<32x16xf32> to vector<32xf32>
    %581 = vector.shape_cast %580 : vector<32xf32> to vector<32x1xf32>
    %c0_171 = arith.constant 0 : index
    %c0_172 = arith.constant 0 : index
    %582 = memref.load %arg8[%c0_171, %c0_172] : memref<1x1xf32, #tpu.memory_space<smem>>
    %c0_173 = arith.constant 0 : index
    %c0_174 = arith.constant 0 : index
    %583 = vector.load %arg1[%c0_173, %c0_174] : memref<32x1xf32, #tpu.memory_space<vmem>>, vector<32x1xf32>
    %584 = vector.broadcast %582 : f32 to vector<32x1xf32>
    %585 = arith.mulf %584, %583 : vector<32x1xf32>
    %586 = arith.addf %581, %585 : vector<32x1xf32>
    %587 = vector.extract_strided_slice %586 {offsets = [0, 0], sizes = [16, 1], strides = [1, 1]} : vector<32x1xf32> to vector<16x1xf32>
    %588 = vector.shape_cast %587 : vector<16x1xf32> to vector<1x16x1xf32>
    %cst_175 = arith.constant dense<0.000000e+00> : vector<1xf32>
    %589 = vector.multi_reduction <add>, %588, %cst_175 [1, 2] : vector<1x16x1xf32> to vector<1xf32>
    %590 = vector.shape_cast %589 : vector<1xf32> to vector<1x1x1xf32>
    %591 = vector.extract %590[0, 0, 0] : f32 from vector<1x1x1xf32>
    %592 = vector.broadcast %591 : f32 to vector<1x1xf32>
    %cst_176 = arith.constant 1.600000e+01 : f32
    %593 = vector.broadcast %cst_176 : f32 to vector<1x1xf32>
    %594 = arith.divf %592, %593 : vector<1x1xf32>
    %595 = vector.broadcast %594 : vector<1x1xf32> to vector<16x1xf32>
    %596 = arith.subf %587, %595 : vector<16x1xf32>
    %597 = arith.mulf %596, %596 : vector<16x1xf32>
    %598 = vector.shape_cast %597 : vector<16x1xf32> to vector<1x16x1xf32>
    %cst_177 = arith.constant dense<0.000000e+00> : vector<1xf32>
    %599 = vector.multi_reduction <add>, %598, %cst_177 [1, 2] : vector<1x16x1xf32> to vector<1xf32>
    %600 = vector.shape_cast %599 : vector<1xf32> to vector<1x1x1xf32>
    %601 = vector.extract %600[0, 0, 0] : f32 from vector<1x1x1xf32>
    %602 = vector.broadcast %601 : f32 to vector<1x1xf32>
    %cst_178 = arith.constant 1.600000e+01 : f32
    %603 = vector.broadcast %cst_178 : f32 to vector<1x1xf32>
    %604 = arith.divf %602, %603 : vector<1x1xf32>
    %cst_179 = arith.constant 9.99999974E-6 : f32
    %605 = vector.broadcast %cst_179 : f32 to vector<1x1xf32>
    %606 = arith.addf %604, %605 : vector<1x1xf32>
    %607 = math.rsqrt %606 : vector<1x1xf32>
    %608 = vector.extract_strided_slice %586 {offsets = [16, 0], sizes = [16, 1], strides = [1, 1]} : vector<32x1xf32> to vector<16x1xf32>
    %609 = vector.shape_cast %608 : vector<16x1xf32> to vector<1x16x1xf32>
    %cst_180 = arith.constant dense<0.000000e+00> : vector<1xf32>
    %610 = vector.multi_reduction <add>, %609, %cst_180 [1, 2] : vector<1x16x1xf32> to vector<1xf32>
    %611 = vector.shape_cast %610 : vector<1xf32> to vector<1x1x1xf32>
    %612 = vector.extract %611[0, 0, 0] : f32 from vector<1x1x1xf32>
    %613 = vector.broadcast %612 : f32 to vector<1x1xf32>
    %cst_181 = arith.constant 1.600000e+01 : f32
    %614 = vector.broadcast %cst_181 : f32 to vector<1x1xf32>
    %615 = arith.divf %613, %614 : vector<1x1xf32>
    %616 = vector.broadcast %615 : vector<1x1xf32> to vector<16x1xf32>
    %617 = arith.subf %608, %616 : vector<16x1xf32>
    %618 = arith.mulf %617, %617 : vector<16x1xf32>
    %619 = vector.shape_cast %618 : vector<16x1xf32> to vector<1x16x1xf32>
    %cst_182 = arith.constant dense<0.000000e+00> : vector<1xf32>
    %620 = vector.multi_reduction <add>, %619, %cst_182 [1, 2] : vector<1x16x1xf32> to vector<1xf32>
    %621 = vector.shape_cast %620 : vector<1xf32> to vector<1x1x1xf32>
    %622 = vector.extract %621[0, 0, 0] : f32 from vector<1x1x1xf32>
    %623 = vector.broadcast %622 : f32 to vector<1x1xf32>
    %cst_183 = arith.constant 1.600000e+01 : f32
    %624 = vector.broadcast %cst_183 : f32 to vector<1x1xf32>
    %625 = arith.divf %623, %624 : vector<1x1xf32>
    %cst_184 = arith.constant 9.99999974E-6 : f32
    %626 = vector.broadcast %cst_184 : f32 to vector<1x1xf32>
    %627 = arith.addf %625, %626 : vector<1x1xf32>
    %628 = math.rsqrt %627 : vector<1x1xf32>
    %629 = tpu.iota {dimensions = array<i32: 0>} : vector<32x1xi32>
    %cst_185 = arith.constant 0.000000e+00 : f32
    %630 = vector.broadcast %cst_185 : f32 to vector<32x1xf32>
    %c0_i32_186 = arith.constant 0 : i32
    %631 = vector.broadcast %c0_i32_186 : i32 to vector<32x1xi32>
    %632 = arith.cmpi sge, %629, %631 : vector<32x1xi32>
    %c16_i32_187 = arith.constant 16 : i32
    %633 = vector.broadcast %c16_i32_187 : i32 to vector<32x1xi32>
    %634 = arith.cmpi slt, %629, %633 : vector<32x1xi32>
    %635 = arith.andi %632, %634 : vector<32x1xi1>
    %636 = vector.shape_cast %594 : vector<1x1xf32> to vector<1x1xf32>
    %637 = vector.broadcast %636 : vector<1x1xf32> to vector<32x1xf32>
    %638 = arith.select %635, %637, %630 : vector<32x1xi1>, vector<32x1xf32>
    %c16_i32_188 = arith.constant 16 : i32
    %639 = vector.broadcast %c16_i32_188 : i32 to vector<32x1xi32>
    %640 = arith.cmpi sge, %629, %639 : vector<32x1xi32>
    %c32_i32_189 = arith.constant 32 : i32
    %641 = vector.broadcast %c32_i32_189 : i32 to vector<32x1xi32>
    %642 = arith.cmpi slt, %629, %641 : vector<32x1xi32>
    %643 = arith.andi %640, %642 : vector<32x1xi1>
    %644 = vector.shape_cast %615 : vector<1x1xf32> to vector<1x1xf32>
    %645 = vector.broadcast %644 : vector<1x1xf32> to vector<32x1xf32>
    %646 = arith.select %643, %645, %638 : vector<32x1xi1>, vector<32x1xf32>
    %647 = arith.subf %586, %646 : vector<32x1xf32>
    %648 = tpu.iota {dimensions = array<i32: 0>} : vector<32x1xi32>
    %cst_190 = arith.constant 0.000000e+00 : f32
    %649 = vector.broadcast %cst_190 : f32 to vector<32x1xf32>
    %c0_i32_191 = arith.constant 0 : i32
    %650 = vector.broadcast %c0_i32_191 : i32 to vector<32x1xi32>
    %651 = arith.cmpi sge, %648, %650 : vector<32x1xi32>
    %c16_i32_192 = arith.constant 16 : i32
    %652 = vector.broadcast %c16_i32_192 : i32 to vector<32x1xi32>
    %653 = arith.cmpi slt, %648, %652 : vector<32x1xi32>
    %654 = arith.andi %651, %653 : vector<32x1xi1>
    %655 = vector.shape_cast %607 : vector<1x1xf32> to vector<1x1xf32>
    %656 = vector.broadcast %655 : vector<1x1xf32> to vector<32x1xf32>
    %657 = arith.select %654, %656, %649 : vector<32x1xi1>, vector<32x1xf32>
    %c16_i32_193 = arith.constant 16 : i32
    %658 = vector.broadcast %c16_i32_193 : i32 to vector<32x1xi32>
    %659 = arith.cmpi sge, %648, %658 : vector<32x1xi32>
    %c32_i32_194 = arith.constant 32 : i32
    %660 = vector.broadcast %c32_i32_194 : i32 to vector<32x1xi32>
    %661 = arith.cmpi slt, %648, %660 : vector<32x1xi32>
    %662 = arith.andi %659, %661 : vector<32x1xi1>
    %663 = vector.shape_cast %628 : vector<1x1xf32> to vector<1x1xf32>
    %664 = vector.broadcast %663 : vector<1x1xf32> to vector<32x1xf32>
    %665 = arith.select %662, %664, %657 : vector<32x1xi1>, vector<32x1xf32>
    %666 = arith.mulf %647, %665 : vector<32x1xf32>
    %c0_195 = arith.constant 0 : index
    %c0_196 = arith.constant 0 : index
    %667 = vector.load %arg9[%c0_195, %c0_196] : memref<32x1xf32, #tpu.memory_space<vmem>>, vector<32x1xf32>
    tpu.vector_store %arg9[%c0_195, %c0_196], %666 {strides = array<i32>} : memref<32x1xf32, #tpu.memory_space<vmem>>, vector<32x1xf32>,
    return
  }
}

</mosaic_0001>

<bundles_post_ra>
// kernel: tpu_custom_call.1
= control target key start
LH: loop header
LB: loop body
LE: loop exit
PB: predicated region body
PF: predicated region fallthrough
CT: control target
= control target key end

     0   :  { %15 = vsyncpa [#allocation4], 0  ;;  %s2310_s0 = inlined_call_operand.hbm [shape: f32[32,32], index: 0, kind: input, shape index: {}]   ;;  %s2311_s1 = inlined_call_operand.vmem [shape: f32[32,1], index: 1, kind: input, shape index: {}]   ;;  %s2312_s2 = inlined_call_operand.vmem [shape: bf16[3,32,32], index: 2, kind: input, shape index: {}]   ;;  %s2313_s3 = inlined_call_operand.hbm [shape: bf16[3,32,32], index: 3, kind: input, shape index: {}]   ;;  %s2314_s4 = inlined_call_operand.hbm [shape: bf16[3,32,32], index: 4, kind: input, shape index: {}]   ;;  %s2315_s5 = inlined_call_operand.vmem [shape: f32[1,32], index: 5, kind: input, shape index: {}]   ;;  %s2316_s6 = inlined_call_operand.vmem [shape: bf16[32,16], index: 6, kind: input, shape index: {}]   ;;  %s2317_s7 = inlined_call_operand.vmem [shape: f32[1,16], index: 7, kind: input, shape index: {}]   ;;  %s2318_s8 = inlined_call_operand.<no memory space> [shape: f32[1,1], index: 8, kind: input, shape index: {}]   ;;  %s2319_s9 = inlined_call_operand.vmem [shape: f32[32,1], index: 9, kind: output, shape index: {}]  }
   0x1   :  { %16 = vsyncpa [#allocation6], 0  ;;  %s38_s11 = sshll.u32 %s2313_s3, 4  ;;  %s1886_s12 = smov [#allocation5]   ;;  %s39_s11 = int_to_ptr.hbm [resolvable:$true] %s38_s11 }
   0x2   :  { %s40_s13 = sshll.u32 %s1886_s12, 4  ;;  %s21_s16 = sshll.u32 %s2310_s0, 4  ;;  %s41_s13 = int_to_ptr.vmem [resolvable:$true] %s40_s13  ;;  %s22_s16 = int_to_ptr.hbm [resolvable:$true] %s21_s16 }
   0x3   :  { %s1887_s17 = smov 64   ;;  %s1888_s18 = smov 4  }
   0x4   :  { %46 = dma.hbm_to_vmem [thread:$0]  %s39_s11, 768, %s41_s13, [#allocation6], %s1887_s17, %s1887_s17, %s1888_s18  }
   0x5   :  { %s1889_s19 = smov [#allocation3]   ;;  %s1890_s21 = smov 128  }
   0x6   :  { %s23_s20 = sshll.u32 %s1889_s19, 4  ;;  %s1891_s22 = smov 8   ;;  %s24_s20 = int_to_ptr.vmem [resolvable:$true] %s23_s20 }
   0x7   :  { %29 = dma.hbm_to_vmem [thread:$0]  %s22_s16, 512, %s24_s20, [#allocation4], %s1890_s21, %s1890_s21, %s1891_s22  }
   0x8   :  { %s51_s24 = sshll.u32 %s2314_s4, 4  ;;  %s1892_s25 = smov [#allocation7]   ;;  %s52_s24 = int_to_ptr.hbm [resolvable:$true] %s51_s24 }
   0x9   :  { %s53_s26 = sshll.u32 %s1892_s25, 4  ;;  %s54_s26 = int_to_ptr.vmem [resolvable:$true] %s53_s26 }
   0xa   :  { %59 = dma.hbm_to_vmem [thread:$0]  %s52_s24, 768, %s54_s26, [#allocation6], %s1887_s17, %s1887_s17, %s1888_s18  }
   0xb   :  { %1882 = dma.done.wait [#allocation4], 512  }
   0xc   :  { %1883 = vsyncadd [#allocation4], 4294966784 }
   0xd   :  { %1884 = dma.done.wait [#allocation6], 1536  }
   0xe   :  { %1885 = vsyncadd [#allocation6], 4294965760  ;;  %v1654_v0 = vld [vmem:[%s2312_s2 + $0x8] sm:$0xff]  ;;  %v1653_v1 = vld [vmem:[%s2312_s2] sm:$0xff]  ;;  %vm103_vm0 = vcmask 261120   ;;  %v1893_v25 = vmov 512.0  }
   0xf   :  { %116 = vmatpush.bf16.msra.mxu0 %v1654_v0  ;;  %v1962_v2 = vld [vmem:[#allocation3] sm:$0xff]  ;;  %v1964_v3 = vld [vmem:[#allocation3 + $0x8] sm:$0xff]  ;;  %1673 = vmatpush.bf16.msra.mxu2 %v1654_v0  ;;  %v1969_v5 = vld [vmem:[#allocation3 + $0x10] sm:$0xff]  ;;  %1754 = vrcp.f32 %v1893_v25 }
  0x10   :  { %v89_v4 = vpack.c.bf16 %v1964_v3, %v1962_v2  ;;  %v1971_v6 = vld [vmem:[#allocation3 + $0x18] sm:$0xff]  ;;  %v1656_v55 = vld [vmem:[#allocation5 + $0x8] sm:$0xff]  ;;  %v1655_v56 = vld [vmem:[#allocation5] sm:$0xff] }
  0x11   :  { %v90_v7 = vpack.c.bf16 %v1971_v6, %v1969_v5  ;;  %305 = vmatpush.bf16.msra.mxu1 %v1656_v55  ;;  %1675 = vmatpush.bf16.msra.mxu3 %v1656_v55 }
  0x13   :  { %117 = vmatpush.bf16.msra.mxu0 %v1653_v1  ;;  %1674 = vmatpush.bf16.msra.mxu2 %v1653_v1 }
  0x15   :  { %v1755_v26 = vpop.eup %1754  ;;  %306 = vmatpush.bf16.msra.mxu1 %v1655_v56  ;;  %1676 = vmatpush.bf16.msra.mxu3 %v1655_v56 }
  0x16   :  { %1553 = vmatmul.msk.bf16.vlgmr.msra.gmra.mxu0 %vm103_vm0, %v89_v4  ;;  %1554 = vmatmul.msk.bf16.vlgmr.msra.gmra.mxu2 %vm103_vm0, %v90_v7  ;;  %v143_v27 = vmul.f32 512.0, %v1755_v26  ;;  %vm147_vm1 = vweird.f32 %v1755_v26 }
  0x18   :  { %v144_v28 = vsub.f32 1.0, %v143_v27  ;;  %v1657_v27 = vld [vmem:[%s2312_s2 + $0x10] sm:$0xff] }
  0x1a   :  { %v145_v29 = vmul.f32 %v1755_v26, %v144_v28 }
  0x1c   :  { %v146_v30 = vadd.f32 %v1755_v26, %v145_v29 }
  0x1e   :  { %v1983_v31 = vsel %vm147_vm1, %v1755_v26, %v146_v30  ;;  %v1658_v26 = vld [vmem:[%s2312_s2 + $0x18] sm:$0xff] }
  0x1f   :  { %389 = vmatpush.bf16.msrb.mxu2 %v1658_v26 }
  0x23   :  { %390 = vmatpush.bf16.msrb.mxu2 %v1657_v27 }
  0x93   :  { %v119_v8 = vpop.f32.mrf.mxu0 }
  0x94   :  { %v129_v10 = vsel %vm103_vm0, %v119_v8, 0.0 }
  0x99   :  { %v1978_v13 = vpop.f32.mrf.mxu2 }
  0x9a   :  { %v179_v14 = vsel %vm103_vm0, %v1978_v13, 0.0 }
  0x9b   :  { %v121_v9 = vpop.f32.mrf.mxu0 }
  0x9c   :  { %v130_v11 = vsel %vm103_vm0, %v121_v9, 0.0 }
  0x9d   :  { %v131_v12 = vadd.f32 %v130_v11, %v129_v10 }
  0x9f   :  { %132 = vadd.xlane.f32.xlu0 %v131_v12 }
  0xa1   :  { %v126_v15 = vpop.f32.mrf.mxu2 }
  0xa2   :  { %v180_v16 = vsel %vm103_vm0, %v126_v15, 0.0 }
  0xa3   :  { %v181_v17 = vadd.f32 %v180_v16, %v179_v14 }
  0xa5   :  { %182 = vadd.xlane.f32.xlu1 %v181_v17 }
 0x112   :  { %v133_v18 = vpop.xlane.xlu0 %132 }
 0x113   :  { %v134_v19 = vrot.slane %v133_v18, 4 }
 0x115   :  { %v135_v20 = vadd.f32 %v134_v19, %v133_v18 }
 0x117   :  { %v136_v21 = vrot.slane %v135_v20, 2 }
 0x118   :  { %v183_v41 = vpop.xlane.xlu1 %182 }
 0x119   :  { %v137_v22 = vadd.f32 %v136_v21, %v135_v20  ;;  %v184_v42 = vrot.slane %v183_v41, 4 }
 0x11b   :  { %v138_v23 = vrot.slane %v137_v22, 1  ;;  %v185_v43 = vadd.f32 %v184_v42, %v183_v41 }
 0x11d   :  { %v139_v24 = vadd.f32 %v138_v23, %v137_v22  ;;  %v186_v44 = vrot.slane %v185_v43, 2 }
 0x11f   :  { %1677 = vpush %v139_v24  ;;  %v187_v48 = vadd.f32 %v186_v44, %v185_v43 }
 0x121   :  { %v188_v51 = vrot.slane %v187_v48, 1 }
 0x123   :  { %v189_v54 = vadd.f32 %v188_v51, %v187_v48 }
 0x150   :  { %s1678_s4 = spop %1677 }
 0x151   :  { %v141_v32 = vstv %s1678_s4 }
 0x152   :  { %v149_v33 = vmul.f32 %v1983_v31, %v141_v32 }
 0x154   :  { %v150_v34 = vsub.f32 %v119_v8, %v149_v33  ;;  %v151_v35 = vsub.f32 %v121_v9, %v149_v33 }
 0x156   :  { %v152_v36 = vmul.f32 %v150_v34, %v150_v34  ;;  %v153_v37 = vmul.f32 %v151_v35, %v151_v35 }
 0x158   :  { %v154_v38 = vsel %vm103_vm0, %v152_v36, 0.0  ;;  %v155_v39 = vsel %vm103_vm0, %v153_v37, 0.0 }
 0x159   :  { %v156_v40 = vadd.f32 %v155_v39, %v154_v38 }
 0x15b   :  { %157 = vadd.xlane.f32.xlu0 %v156_v40 }
 0x1ce   :  { %v158_v45 = vpop.xlane.xlu0 %157 }
 0x1cf   :  { %v159_v46 = vrot.slane %v158_v45, 4 }
 0x1d1   :  { %v160_v47 = vadd.f32 %v159_v46, %v158_v45 }
 0x1d3   :  { %v161_v49 = vrot.slane %v160_v47, 2 }
 0x1d5   :  { %v162_v50 = vadd.f32 %v161_v49, %v160_v47 }
 0x1d7   :  { %v163_v52 = vrot.slane %v162_v50, 1 }
 0x1d9   :  { %v164_v53 = vadd.f32 %v163_v52, %v162_v50 }
 0x1db   :  { %1679 = vpush %v164_v53 }
 0x1dc   :  { %1681 = vpush %v189_v54 }
 0x20c   :  { %s1680_s30 = spop %1679 }
 0x20d   :  { %v166_v57 = vstv %s1680_s30  ;;  %s1682_s10 = spop %1681 }
 0x20e   :  { %v167_v58 = vmul.f32 %v166_v57, %v1983_v31  ;;  %v191_v59 = vstv %s1682_s10 }
 0x20f   :  { %v192_v60 = vmul.f32 %v191_v59, %v1983_v31 }
 0x210   :  { %v168_v61 = vadd.f32 1e-05, %v167_v58 }
 0x211   :  { %v1991_v62 = vsub.f32 %v1978_v13, %v192_v60  ;;  %v1993_v63 = vsub.f32 %v126_v15, %v192_v60 }
 0x212   :  { %1756 = vrsqrt.f32 %v168_v61  ;;  %vm175_vm3 = vweird.f32 %v168_v61 }
 0x213   :  { %v195_v0 = vmul.f32 %v1991_v62, %v1991_v62  ;;  %v196_v1 = vmul.f32 %v1993_v63, %v1993_v63 }
 0x215   :  { %v197_v4 = vsel %vm103_vm0, %v195_v0, 0.0  ;;  %v198_v7 = vsel %vm103_vm0, %v196_v1, 0.0 }
 0x216   :  { %v199_v8 = vadd.f32 %v198_v7, %v197_v4 }
 0x218   :  { %v1757_v9 = vpop.eup %1756  ;;  %200 = vadd.xlane.f32.xlu1 %v199_v8 }
 0x219   :  { %v170_v10 = vmul.f32 %v1757_v9, %v168_v61  ;;  %vm176_vm2 = vweird.f32 %v1757_v9 }
 0x21a   :  { %vm177_vm4 = vmor %vm175_vm3, %vm176_vm2 }
 0x21b   :  { %v171_v11 = vmul.f32 %v1757_v9, %v170_v10 }
 0x21d   :  { %v172_v12 = vmul.f32 0.5, %v171_v11 }
 0x21f   :  { %v173_v13 = vsub.f32 1.5, %v172_v12 }
 0x221   :  { %v174_v14 = vmul.f32 %v1757_v9, %v173_v13 }
 0x223   :  { %v178_v15 = vsel %vm177_vm4, %v1757_v9, %v174_v14 }
 0x224   :  { %v271_v16 = vmul.f32 %v178_v15, %v150_v34  ;;  %v272_v17 = vmul.f32 %v178_v15, %v151_v35 }
 0x226   :  { %v279_v18 = vpack.c.bf16 %v272_v17, %v271_v16 }
 0x228   :  { %1563 = vmatmul.msk.bf16.vlgmr.msra.gmra.mxu1 %vm103_vm0, %v279_v18 }
 0x28b   :  { %v201_v19 = vpop.xlane.xlu1 %200 }
 0x28c   :  { %v202_v20 = vrot.slane %v201_v19, 4 }
 0x28e   :  { %v203_v21 = vadd.f32 %v202_v20, %v201_v19 }
 0x290   :  { %v204_v22 = vrot.slane %v203_v21, 2 }
 0x292   :  { %v205_v23 = vadd.f32 %v204_v22, %v203_v21 }
 0x294   :  { %v206_v24 = vrot.slane %v205_v23, 1 }
 0x296   :  { %v207_v25 = vadd.f32 %v206_v24, %v205_v23 }
 0x298   :  { %1683 = vpush %v207_v25 }
 0x2a5   :  { %v308_v28 = vpop.f32.mrf.mxu1 }
 0x2a6   :  { %v322_v29 = vmul.f32 0.044715, %v308_v28  ;;  %v318_v43 = vmul.f32 0.5, %v308_v28 }
 0x2a8   :  { %v326_v30 = vmul.f32 %v322_v29, %v308_v28 }
 0x2aa   :  { %v330_v32 = vmul.f32 %v326_v30, %v308_v28 }
 0x2ac   :  { %v334_v33 = vadd.f32 %v330_v32, %v308_v28 }
 0x2ad   :  { %v310_v34 = vpop.f32.mrf.mxu1 }
 0x2ae   :  { %v338_v35 = vmul.f32 0.7978846, %v334_v33  ;;  %v323_v36 = vmul.f32 0.044715, %v310_v34  ;;  %v319_v46 = vmul.f32 0.5, %v310_v34 }
 0x2b0   :  { %1758 = vtanh.f32 %v338_v35  ;;  %v327_v37 = vmul.f32 %v323_v36, %v310_v34 }
 0x2b2   :  { %v331_v38 = vmul.f32 %v327_v37, %v310_v34 }
 0x2b4   :  { %v335_v39 = vadd.f32 %v331_v38, %v310_v34 }
 0x2b6   :  { %v1759_v40 = vpop.eup %1758  ;;  %v339_v41 = vmul.f32 0.7978846, %v335_v39 }
 0x2b7   :  { %v346_v42 = vadd.f32 1.0, %v1759_v40 }
 0x2b8   :  { %1760 = vtanh.f32 %v339_v41 }
 0x2b9   :  { %v2008_v44 = vmul.f32 %v346_v42, %v318_v43 }
 0x2bb   :  { %v1017_v49 = vmul.f32 %v2008_v44, %v2008_v44  ;;  %v2016_v50 = vadd.f32 %v2008_v44, %v1962_v2  ;;  %v965_v51 = vsel %vm103_vm0, %v2008_v44, 0.0 }
 0x2bd   :  { %v1019_v57 = vsel %vm103_vm0, %v1017_v49, 0.0 }
 0x2be   :  { %v1761_v45 = vpop.eup %1760 }
 0x2bf   :  { %v347_v47 = vadd.f32 1.0, %v1761_v45 }
 0x2c1   :  { %v2010_v48 = vmul.f32 %v347_v47, %v319_v46 }
 0x2c3   :  { %v2022_v52 = vadd.f32 %v2010_v48, %v1964_v3  ;;  %v834_v53 = vpack.c.bf16 %v2010_v48, %v2008_v44  ;;  %v966_v54 = vsel %vm103_vm0, %v2010_v48, 0.0  ;;  %v1018_v55 = vmul.f32 %v2010_v48, %v2010_v48 }
 0x2c4   :  { %v2030_v56 = vadd.f32 %v966_v54, %v965_v51 }
 0x2c5   :  { %v363_v2 = vpack.c.bf16 %v2022_v52, %v2016_v50  ;;  %v1020_v58 = vsel %vm103_vm0, %v1018_v55, 0.0 }
 0x2c6   :  { %v2036_v3 = vadd.f32 %v1020_v58, %v1019_v57 }
 0x2c7   :  { %1577 = vmatmul.msk.bf16.vlgmr.msrb.gmra.mxu2 %vm103_vm0, %v363_v2 }
 0x2c9   :  { %s1684_s15 = spop %1683 }
 0x2ca   :  { %v209_v59 = vstv %s1684_s15 }
 0x2cb   :  { %v210_v60 = vmul.f32 %v209_v59, %v1983_v31 }
 0x2cd   :  { %v211_v61 = vadd.f32 1e-05, %v210_v60 }
 0x2cf   :  { %1762 = vrsqrt.f32 %v211_v61  ;;  %vm218_vm6 = vweird.f32 %v211_v61 }
 0x2d5   :  { %v1763_v0 = vpop.eup %1762 }
 0x2d6   :  { %v213_v1 = vmul.f32 %v1763_v0, %v211_v61  ;;  %vm219_vm5 = vweird.f32 %v1763_v0 }
 0x2d7   :  { %vm220_vm7 = vmor %vm218_vm6, %vm219_vm5 }
 0x2d8   :  { %v214_v4 = vmul.f32 %v1763_v0, %v213_v1 }
 0x2da   :  { %v215_v7 = vmul.f32 0.5, %v214_v4 }
 0x2dc   :  { %v216_v8 = vsub.f32 1.5, %v215_v7 }
 0x2de   :  { %v217_v9 = vmul.f32 %v1763_v0, %v216_v8 }
 0x2e0   :  { %v221_v10 = vsel %vm220_vm7, %v1763_v0, %v217_v9 }
 0x2e1   :  { %v273_v11 = vmul.f32 %v221_v10, %v1991_v62  ;;  %v274_v12 = vmul.f32 %v221_v10, %v1993_v63 }
 0x2e3   :  { %v280_v13 = vpack.c.bf16 %v274_v12, %v273_v11 }
 0x2e5   :  { %1564 = vmatmul.msk.bf16.vlgmr.msra.gmra.mxu3 %vm103_vm0, %v280_v13 }
 0x34a   :  { %v392_v14 = vpop.f32.mrf.mxu2 }
 0x34b   :  { %v402_v16 = vsel %vm103_vm0, %v392_v14, 0.0 }
 0x352   :  { %v394_v15 = vpop.f32.mrf.mxu2 }
 0x353   :  { %v403_v17 = vsel %vm103_vm0, %v394_v15, 0.0 }
 0x354   :  { %v404_v18 = vadd.f32 %v403_v17, %v402_v16 }
 0x356   :  { %405 = vadd.xlane.f32.xlu2 %v404_v18 }
 0x368   :  { %v313_v19 = vpop.f32.mrf.mxu3 }
 0x369   :  { %v324_v20 = vmul.f32 0.044715, %v313_v19  ;;  %v320_v32 = vmul.f32 0.5, %v313_v19 }
 0x36b   :  { %v328_v21 = vmul.f32 %v324_v20, %v313_v19 }
 0x36d   :  { %v332_v22 = vmul.f32 %v328_v21, %v313_v19 }
 0x36f   :  { %v336_v23 = vadd.f32 %v332_v22, %v313_v19 }
 0x370   :  { %v315_v24 = vpop.f32.mrf.mxu3 }
 0x371   :  { %v340_v62 = vmul.f32 0.7978846, %v336_v23  ;;  %v325_v25 = vmul.f32 0.044715, %v315_v24  ;;  %v321_v35 = vmul.f32 0.5, %v315_v24 }
 0x373   :  { %1764 = vtanh.f32 %v340_v62  ;;  %v329_v63 = vmul.f32 %v325_v25, %v315_v24 }
 0x375   :  { %v333_v26 = vmul.f32 %v329_v63, %v315_v24 }
 0x377   :  { %v337_v27 = vadd.f32 %v333_v26, %v315_v24 }
 0x379   :  { %v1765_v28 = vpop.eup %1764  ;;  %v341_v29 = vmul.f32 0.7978846, %v337_v27 }
 0x37a   :  { %v348_v30 = vadd.f32 1.0, %v1765_v28  ;;  %v1660_v28 = vld [vmem:[#allocation5 + $0x18] sm:$0xff] }
 0x37b   :  { %1766 = vtanh.f32 %v341_v29  ;;  %543 = vmatpush.bf16.msrb.mxu3 %v1660_v28  ;;  %v1659_v29 = vld [vmem:[#allocation5 + $0x10] sm:$0xff] }
 0x37c   :  { %v2045_v33 = vmul.f32 %v348_v30, %v320_v32 }
 0x37e   :  { %v1126_v38 = vmul.f32 %v2045_v33, %v2045_v33  ;;  %v2053_v39 = vadd.f32 %v2045_v33, %v1969_v5  ;;  %v1081_v40 = vsel %vm103_vm0, %v2045_v33, 0.0 }
 0x37f   :  { %544 = vmatpush.bf16.msrb.mxu3 %v1659_v29 }
 0x380   :  { %v1128_v47 = vsel %vm103_vm0, %v1126_v38, 0.0 }
 0x381   :  { %v1767_v34 = vpop.eup %1766 }
 0x382   :  { %v349_v36 = vadd.f32 1.0, %v1767_v34 }
 0x384   :  { %v2047_v37 = vmul.f32 %v349_v36, %v321_v35 }
 0x386   :  { %v2059_v41 = vadd.f32 %v2047_v37, %v1971_v6  ;;  %v835_v42 = vpack.c.bf16 %v2047_v37, %v2045_v33  ;;  %v1082_v43 = vsel %vm103_vm0, %v2047_v37, 0.0  ;;  %v1127_v45 = vmul.f32 %v2047_v37, %v2047_v37 }
 0x387   :  { %v2067_v46 = vadd.f32 %v1082_v43, %v1081_v40 }
 0x388   :  { %v364_v5 = vpack.c.bf16 %v2059_v41, %v2053_v39  ;;  %v1129_v49 = vsel %vm103_vm0, %v1127_v45, 0.0 }
 0x389   :  { %v2073_v6 = vadd.f32 %v1129_v49, %v1128_v47 }
 0x38a   :  { %1578 = vmatmul.msk.bf16.gmra.mxu2 %vm103_vm0, %v364_v5 }
 0x3c9   :  { %v406_v51 = vpop.xlane.xlu2 %405 }
 0x3ca   :  { %v407_v54 = vrot.slane %v406_v51, 4 }
 0x3cc   :  { %v408_v55 = vadd.f32 %v407_v54, %v406_v51 }
 0x3ce   :  { %v409_v2 = vrot.slane %v408_v55, 2 }
 0x3d0   :  { %v410_v57 = vadd.f32 %v409_v2, %v408_v55 }
 0x3d2   :  { %v411_v58 = vrot.slane %v410_v57, 1 }
 0x3d4   :  { %v412_v59 = vadd.f32 %v411_v58, %v410_v57 }
 0x3d6   :  { %1685 = vpush %v412_v59 }
 0x407   :  { %s1686_s16 = spop %1685 }
 0x408   :  { %v414_v60 = vstv %s1686_s16 }
 0x409   :  { %v415_v61 = vmul.f32 %v414_v60, %v1983_v31 }
 0x40b   :  { %v416_v0 = vsub.f32 %v392_v14, %v415_v61  ;;  %v417_v1 = vsub.f32 %v394_v15, %v415_v61 }
 0x40d   :  { %v397_v4 = vpop.f32.mrf.mxu2  ;;  %v418_v7 = vmul.f32 %v416_v0, %v416_v0  ;;  %v419_v8 = vmul.f32 %v417_v1, %v417_v1 }
 0x40e   :  { %v445_v13 = vsel %vm103_vm0, %v397_v4, 0.0 }
 0x40f   :  { %v420_v9 = vsel %vm103_vm0, %v418_v7, 0.0  ;;  %v421_v10 = vsel %vm103_vm0, %v419_v8, 0.0 }
 0x410   :  { %v422_v11 = vadd.f32 %v421_v10, %v420_v9 }
 0x412   :  { %423 = vadd.xlane.f32.xlu2 %v422_v11 }
 0x415   :  { %v399_v12 = vpop.f32.mrf.mxu2 }
 0x416   :  { %v446_v16 = vsel %vm103_vm0, %v399_v12, 0.0 }
 0x417   :  { %v447_v17 = vadd.f32 %v446_v16, %v445_v13  ;;  %v1668_v16 = vld [vmem:[#allocation7 + $0x18] sm:$0xff] }
 0x418   :  { %867 = vmatpush.bf16.msra.mxu2 %v1668_v16 }
 0x419   :  { %448 = vadd.xlane.f32.xlu0 %v447_v17  ;;  %v1662_v17 = vld [vmem:[%s2312_s2 + $0x28] sm:$0xff] }
 0x41a   :  { %627 = vmatpush.bf16.msrb.mxu0 %v1662_v17 }
 0x485   :  { %v424_v18 = vpop.xlane.xlu2 %423 }
 0x486   :  { %v425_v19 = vrot.slane %v424_v18, 4 }
 0x488   :  { %v426_v14 = vadd.f32 %v425_v19, %v424_v18 }
 0x48a   :  { %v427_v15 = vrot.slane %v426_v14, 2 }
 0x48c   :  { %v449_v20 = vpop.xlane.xlu0 %448  ;;  %v428_v21 = vadd.f32 %v427_v15, %v426_v14 }
 0x48d   :  { %v450_v22 = vrot.slane %v449_v20, 4 }
 0x48e   :  { %v429_v23 = vrot.slane %v428_v21, 1 }
 0x48f   :  { %v451_v24 = vadd.f32 %v450_v22, %v449_v20 }
 0x490   :  { %v430_v62 = vadd.f32 %v429_v23, %v428_v21 }
 0x491   :  { %v452_v25 = vrot.slane %v451_v24, 2 }
 0x492   :  { %1687 = vpush %v430_v62 }
 0x493   :  { %v453_v63 = vadd.f32 %v452_v25, %v451_v24 }
 0x495   :  { %v454_v26 = vrot.slane %v453_v63, 1 }
 0x497   :  { %v455_v27 = vadd.f32 %v454_v26, %v453_v63 }
 0x499   :  { %1689 = vpush %v455_v27 }
 0x4c3   :  { %s1688_s17 = spop %1687 }
 0x4c4   :  { %v432_v30 = vstv %s1688_s17 }
 0x4c5   :  { %v433_v32 = vmul.f32 %v432_v30, %v1983_v31 }
 0x4c7   :  { %v434_v34 = vadd.f32 1e-05, %v433_v32 }
 0x4c9   :  { %1768 = vrsqrt.f32 %v434_v34  ;;  %vm441_vm9 = vweird.f32 %v434_v34 }
 0x4ca   :  { %s1690_s18 = spop %1689 }
 0x4cb   :  { %v457_v35 = vstv %s1690_s18 }
 0x4cc   :  { %v458_v36 = vmul.f32 %v457_v35, %v1983_v31 }
 0x4ce   :  { %v2083_v38 = vsub.f32 %v397_v4, %v458_v36  ;;  %v2085_v40 = vsub.f32 %v399_v12, %v458_v36 }
 0x4cf   :  { %v1769_v43 = vpop.eup %1768 }
 0x4d0   :  { %v436_v45 = vmul.f32 %v1769_v43, %v434_v34  ;;  %v461_v5 = vmul.f32 %v2083_v38, %v2083_v38  ;;  %v462_v47 = vmul.f32 %v2085_v40, %v2085_v40  ;;  %vm442_vm8 = vweird.f32 %v1769_v43 }
 0x4d1   :  { %vm443_vm10 = vmor %vm441_vm9, %vm442_vm8  ;;  %vm1265_vm9 = vcmask 130048  }
 0x4d2   :  { %v437_v49 = vmul.f32 %v1769_v43, %v436_v45  ;;  %v463_v51 = vsel %vm103_vm0, %v461_v5, 0.0  ;;  %v464_v54 = vsel %vm103_vm0, %v462_v47, 0.0 }
 0x4d3   :  { %v465_v55 = vadd.f32 %v464_v54, %v463_v51 }
 0x4d4   :  { %v438_v2 = vmul.f32 0.5, %v437_v49 }
 0x4d5   :  { %466 = vadd.xlane.f32.xlu1 %v465_v55 }
 0x4d6   :  { %v439_v57 = vsub.f32 1.5, %v438_v2  ;;  %v1666_v2 = vld [vmem:[#allocation7 + $0x8] sm:$0xff] }
 0x4d7   :  { %904 = vmatpush.bf16.msra.mxu3 %v1666_v2 }
 0x4d8   :  { %v440_v58 = vmul.f32 %v1769_v43, %v439_v57 }
 0x4da   :  { %v444_v59 = vsel %vm443_vm10, %v1769_v43, %v440_v58 }
 0x4db   :  { %v508_v60 = vmul.f32 %v444_v59, %v416_v0  ;;  %v509_v61 = vmul.f32 %v444_v59, %v417_v1  ;;  %v1667_v0 = vld [vmem:[#allocation7 + $0x10] sm:$0xff] }
 0x4dc   :  { %v1661_v1 = vld [vmem:[%s2312_s2 + $0x20] sm:$0xff]  ;;  %868 = vmatpush.bf16.msra.mxu2 %v1667_v0 }
 0x4dd   :  { %v517_v4 = vpack.c.bf16 %v509_v61, %v508_v60  ;;  %628 = vmatpush.bf16.msrb.mxu0 %v1661_v1 }
 0x4df   :  { %1587 = vmatmul.msk.bf16.vlgmr.msrb.gmra.mxu3 %vm103_vm0, %v517_v4 }
 0x548   :  { %v467_v7 = vpop.xlane.xlu1 %466 }
 0x549   :  { %v468_v8 = vrot.slane %v467_v7, 4 }
 0x54b   :  { %v469_v9 = vadd.f32 %v468_v8, %v467_v7 }
 0x54d   :  { %v470_v10 = vrot.slane %v469_v9, 2 }
 0x54f   :  { %v471_v11 = vadd.f32 %v470_v10, %v469_v9 }
 0x551   :  { %v472_v12 = vrot.slane %v471_v11, 1 }
 0x553   :  { %v473_v13 = vadd.f32 %v472_v12, %v471_v11 }
 0x555   :  { %1691 = vpush %v473_v13 }
 0x562   :  { %v546_v18 = vpop.f32.mrf.mxu3 }
 0x563   :  { %v560_v19 = vmul.f32 0.044715, %v546_v18  ;;  %v556_v28 = vmul.f32 0.5, %v546_v18 }
 0x565   :  { %v564_v14 = vmul.f32 %v560_v19, %v546_v18 }
 0x567   :  { %v568_v15 = vmul.f32 %v564_v14, %v546_v18 }
 0x569   :  { %v572_v20 = vadd.f32 %v568_v15, %v546_v18 }
 0x56a   :  { %v548_v21 = vpop.f32.mrf.mxu3 }
 0x56b   :  { %v576_v22 = vmul.f32 0.7978846, %v572_v20  ;;  %v561_v23 = vmul.f32 0.044715, %v548_v21  ;;  %v557_v32 = vmul.f32 0.5, %v548_v21 }
 0x56d   :  { %1770 = vtanh.f32 %v576_v22  ;;  %v565_v24 = vmul.f32 %v561_v23, %v548_v21 }
 0x56f   :  { %v569_v62 = vmul.f32 %v565_v24, %v548_v21 }
 0x571   :  { %v573_v25 = vadd.f32 %v569_v62, %v548_v21 }
 0x573   :  { %v1771_v63 = vpop.eup %1770  ;;  %v577_v26 = vmul.f32 0.7978846, %v573_v25 }
 0x574   :  { %v584_v27 = vadd.f32 1.0, %v1771_v63 }
 0x575   :  { %1772 = vtanh.f32 %v577_v26 }
 0x576   :  { %v588_v29 = vmul.f32 %v584_v27, %v556_v28 }
 0x578   :  { %v1033_v36 = vmul.f32 %v588_v29, %v588_v29  ;;  %v592_v43 = vadd.f32 %v588_v29, %v2016_v50  ;;  %v979_v45 = vsel %vm103_vm0, %v588_v29, 0.0  ;;  %v1665_v50 = vld [vmem:[#allocation7] sm:$0xff] }
 0x579   :  { %905 = vmatpush.bf16.msra.mxu3 %v1665_v50 }
 0x57a   :  { %v1035_v57 = vsel %vm103_vm0, %v1033_v36, 0.0 }
 0x57b   :  { %v1773_v30 = vpop.eup %1772 }
 0x57c   :  { %v585_v34 = vadd.f32 1.0, %v1773_v30 }
 0x57e   :  { %v589_v35 = vmul.f32 %v585_v34, %v557_v32 }
 0x580   :  { %v841_v5 = vpack.c.bf16 %v589_v35, %v588_v29  ;;  %v593_v47 = vadd.f32 %v589_v35, %v2022_v52  ;;  %v980_v49 = vsel %vm103_vm0, %v589_v35, 0.0  ;;  %v1034_v51 = vmul.f32 %v589_v35, %v589_v35 }
 0x581   :  { %v2104_v54 = vadd.f32 %v980_v49, %v979_v45 }
 0x582   :  { %1621 = vmatmul.msk.bf16.vlgmr.msra.gmra.mxu2 %vm103_vm0, %v841_v5  ;;  %v601_v55 = vpack.c.bf16 %v593_v47, %v592_v43  ;;  %v1036_v58 = vsel %vm103_vm0, %v1034_v51, 0.0 }
 0x583   :  { %v2109_v59 = vadd.f32 %v1036_v58, %v1035_v57 }
 0x584   :  { %1601 = vmatmul.msk.bf16.vlgmr.msrb.gmra.mxu0 %vm103_vm0, %v601_v55 }
 0x586   :  { %s1692_s2 = spop %1691 }
 0x587   :  { %v475_v52 = vstv %s1692_s2 }
 0x588   :  { %v476_v60 = vmul.f32 %v475_v52, %v1983_v31 }
 0x58a   :  { %v477_v61 = vadd.f32 1e-05, %v476_v60 }
 0x58c   :  { %1774 = vrsqrt.f32 %v477_v61  ;;  %vm484_vm12 = vweird.f32 %v477_v61 }
 0x592   :  { %v1775_v4 = vpop.eup %1774 }
 0x593   :  { %v479_v7 = vmul.f32 %v1775_v4, %v477_v61  ;;  %vm485_vm11 = vweird.f32 %v1775_v4 }
 0x594   :  { %vm486_vm13 = vmor %vm484_vm12, %vm485_vm11 }
 0x595   :  { %v480_v8 = vmul.f32 %v1775_v4, %v479_v7 }
 0x597   :  { %v481_v9 = vmul.f32 0.5, %v480_v8 }
 0x599   :  { %v482_v10 = vsub.f32 1.5, %v481_v9 }
 0x59b   :  { %v483_v11 = vmul.f32 %v1775_v4, %v482_v10 }
 0x59d   :  { %v487_v12 = vsel %vm486_vm13, %v1775_v4, %v483_v11 }
 0x59e   :  { %v510_v13 = vmul.f32 %v487_v12, %v2083_v38  ;;  %v511_v16 = vmul.f32 %v487_v12, %v2085_v40 }
 0x5a0   :  { %v518_v17 = vpack.c.bf16 %v511_v16, %v510_v13 }
 0x5a2   :  { %1588 = vmatmul.msk.bf16.gmra.mxu3 %vm103_vm0, %v518_v17 }
 0x5b2   :  { %1631 = vmatmul.msk.bf16.vlgmr.msra.gmra.mxu3 %vm103_vm0, %v834_v53 }
 0x5c2   :  { %1632 = vmatmul.msk.bf16.gmra.mxu3 %vm103_vm0, %v835_v42 }
 0x601   :  { %v630_v0 = vpop.f32.mrf.mxu0 }
 0x602   :  { %v640_v18 = vsel %vm103_vm0, %v630_v0, 0.0 }
 0x609   :  { %v632_v1 = vpop.f32.mrf.mxu0 }
 0x60a   :  { %v641_v38 = vsel %vm103_vm0, %v632_v1, 0.0 }
 0x60b   :  { %v642_v40 = vadd.f32 %v641_v38, %v640_v18 }
 0x60d   :  { %643 = vadd.xlane.f32.xlu2 %v642_v40 }
 0x625   :  { %v551_v19 = vpop.f32.mrf.mxu3 }
 0x626   :  { %v562_v14 = vmul.f32 0.044715, %v551_v19  ;;  %v558_v62 = vmul.f32 0.5, %v551_v19 }
 0x628   :  { %v566_v15 = vmul.f32 %v562_v14, %v551_v19 }
 0x62a   :  { %v570_v20 = vmul.f32 %v566_v15, %v551_v19 }
 0x62c   :  { %v574_v44 = vadd.f32 %v570_v20, %v551_v19 }
 0x62d   :  { %v553_v48 = vpop.f32.mrf.mxu3 }
 0x62e   :  { %v578_v53 = vmul.f32 0.7978846, %v574_v44  ;;  %v563_v21 = vmul.f32 0.044715, %v553_v48  ;;  %v559_v26 = vmul.f32 0.5, %v553_v48 }
 0x630   :  { %1776 = vtanh.f32 %v578_v53  ;;  %v567_v33 = vmul.f32 %v563_v21, %v553_v48 }
 0x632   :  { %v571_v37 = vmul.f32 %v567_v33, %v553_v48 }
 0x634   :  { %v575_v42 = vadd.f32 %v571_v37, %v553_v48 }
 0x636   :  { %v1777_v22 = vpop.eup %1776  ;;  %v579_v23 = vmul.f32 0.7978846, %v575_v42 }
 0x637   :  { %v586_v24 = vadd.f32 1.0, %v1777_v22 }
 0x638   :  { %1778 = vtanh.f32 %v579_v23 }
 0x639   :  { %v590_v25 = vmul.f32 %v586_v24, %v558_v62 }
 0x63b   :  { %v1142_v29 = vmul.f32 %v590_v25, %v590_v25  ;;  %v594_v30 = vadd.f32 %v590_v25, %v2053_v39  ;;  %v1095_v32 = vsel %vm103_vm0, %v590_v25, 0.0 }
 0x63d   :  { %v1144_v47 = vsel %vm103_vm0, %v1142_v29, 0.0 }
 0x63e   :  { %v1779_v63 = vpop.eup %1778 }
 0x63f   :  { %v587_v27 = vadd.f32 1.0, %v1779_v63 }
 0x641   :  { %v591_v28 = vmul.f32 %v587_v27, %v559_v26 }
 0x643   :  { %v842_v34 = vpack.c.bf16 %v591_v28, %v590_v25  ;;  %v595_v35 = vadd.f32 %v591_v28, %v2059_v41  ;;  %v1096_v36 = vsel %vm103_vm0, %v591_v28, 0.0  ;;  %v1143_v43 = vmul.f32 %v591_v28, %v591_v28 }
 0x644   :  { %v1097_v45 = vadd.f32 %v1096_v36, %v1095_v32 }
 0x645   :  { %1622 = vmatmul.msk.bf16.gmra.mxu2 %vm103_vm0, %v842_v34  ;;  %v602_v5 = vpack.c.bf16 %v595_v35, %v594_v30  ;;  %v1145_v49 = vsel %vm103_vm0, %v1143_v43, 0.0 }
 0x646   :  { %v1146_v51 = vadd.f32 %v1145_v49, %v1144_v47 }
 0x647   :  { %1602 = vmatmul.msk.bf16.gmra.mxu0 %vm103_vm0, %v602_v5 }
 0x680   :  { %v644_v39 = vpop.xlane.xlu2 %643 }
 0x681   :  { %v645_v55 = vrot.slane %v644_v39, 4 }
 0x683   :  { %v646_v2 = vadd.f32 %v645_v55, %v644_v39 }
 0x685   :  { %v647_v57 = vrot.slane %v646_v2, 2 }
 0x687   :  { %v648_v58 = vadd.f32 %v647_v57, %v646_v2 }
 0x689   :  { %v649_v41 = vrot.slane %v648_v58, 1 }
 0x68b   :  { %v650_v50 = vadd.f32 %v649_v41, %v648_v58 }
 0x68d   :  { %1693 = vpush %v650_v50 }
 0x6be   :  { %s1694_s23 = spop %1693 }
 0x6bf   :  { %v652_v52 = vstv %s1694_s23 }
 0x6c0   :  { %v653_v60 = vmul.f32 %v652_v52, %v1983_v31 }
 0x6c2   :  { %v2135_v61 = vsub.f32 %v630_v0, %v653_v60  ;;  %v2137_v4 = vsub.f32 %v632_v1, %v653_v60 }
 0x6c4   :  { %v635_v7 = vpop.f32.mrf.mxu0  ;;  %v656_v8 = vmul.f32 %v2135_v61, %v2135_v61  ;;  %v657_v9 = vmul.f32 %v2137_v4, %v2137_v4 }
 0x6c5   :  { %v683_v16 = vsel %vm103_vm0, %v635_v7, 0.0 }
 0x6c6   :  { %v658_v10 = vsel %vm103_vm0, %v656_v8, 0.0  ;;  %v659_v11 = vsel %vm103_vm0, %v657_v9, 0.0 }
 0x6c7   :  { %v660_v12 = vadd.f32 %v659_v11, %v658_v10 }
 0x6c9   :  { %661 = vadd.xlane.f32.xlu0 %v660_v12 }
 0x6cc   :  { %v637_v13 = vpop.f32.mrf.mxu0 }
 0x6cd   :  { %v684_v17 = vsel %vm103_vm0, %v637_v13, 0.0 }
 0x6ce   :  { %v685_v0 = vadd.f32 %v684_v17, %v683_v16  ;;  %v1669_v16 = vld [vmem:[#allocation7 + $0x20] sm:$0xff] }
 0x6d0   :  { %686 = vadd.xlane.f32.xlu1 %v685_v0 }
 0x6d1   :  { %968 = vadd.xlane.f32.xlu0 %v2030_v56 }
 0x6d8   :  { %982 = vadd.xlane.f32.xlu1 %v2104_v54 }
 0x6d9   :  { %1022 = vadd.xlane.f32.xlu0 %v2036_v3 }
 0x6e0   :  { %1038 = vadd.xlane.f32.xlu1 %v2109_v59 }
 0x6e1   :  { %1084 = vadd.xlane.f32.xlu0 %v2067_v46  ;;  %v1664_v46 = vld [vmem:[#allocation5 + $0x28] sm:$0xff] }
 0x6e2   :  { %781 = vmatpush.bf16.msrb.mxu1 %v1664_v46 }
 0x6e8   :  { %1098 = vadd.xlane.f32.xlu1 %v1097_v45 }
 0x6e9   :  { %1131 = vadd.xlane.f32.xlu0 %v2073_v6  ;;  %v1663_v6 = vld [vmem:[#allocation5 + $0x20] sm:$0xff] }
 0x6ea   :  { %782 = vmatpush.bf16.msrb.mxu1 %v1663_v6 }
 0x6f0   :  { %1147 = vadd.xlane.f32.xlu1 %v1146_v51 }
 0x73c   :  { %v662_v1 = vpop.xlane.xlu0 %661 }
 0x73d   :  { %v663_v18 = vrot.slane %v662_v1, 4 }
 0x73f   :  { %v664_v38 = vadd.f32 %v663_v18, %v662_v1 }
 0x741   :  { %v665_v40 = vrot.slane %v664_v38, 2 }
 0x743   :  { %v687_v19 = vpop.xlane.xlu1 %686  ;;  %v666_v14 = vadd.f32 %v665_v40, %v664_v38 }
 0x744   :  { %v688_v15 = vrot.slane %v687_v19, 4  ;;  %v969_v5 = vpop.xlane.xlu0 %968 }
 0x745   :  { %v667_v56 = vrot.slane %v666_v14, 1  ;;  %v970_v49 = vrot.slane %v969_v5, 4 }
 0x746   :  { %v689_v20 = vadd.f32 %v688_v15, %v687_v19 }
 0x747   :  { %v668_v54 = vadd.f32 %v667_v56, %v666_v14  ;;  %v971_v39 = vadd.f32 %v970_v49, %v969_v5 }
 0x748   :  { %v690_v44 = vrot.slane %v689_v20, 2 }
 0x749   :  { %1695 = vpush %v668_v54  ;;  %v972_v2 = vrot.slane %v971_v39, 2 }
 0x74a   :  { %v691_v3 = vadd.f32 %v690_v44, %v689_v20 }
 0x74b   :  { %v983_v47 = vpop.xlane.xlu1 %982  ;;  %v973_v52 = vadd.f32 %v972_v2, %v971_v39 }
 0x74c   :  { %v692_v59 = vrot.slane %v691_v3, 1  ;;  %v984_v51 = vrot.slane %v983_v47, 4  ;;  %v1023_v39 = vpop.xlane.xlu0 %1022 }
 0x74d   :  { %v974_v8 = vrot.slane %v973_v52, 1  ;;  %v1024_v2 = vrot.slane %v1023_v39, 4 }
 0x74e   :  { %v693_v48 = vadd.f32 %v692_v59, %v691_v3  ;;  %v985_v55 = vadd.f32 %v984_v51, %v983_v47 }
 0x74f   :  { %v975_v11 = vadd.f32 %v974_v8, %v973_v52 }
 0x750   :  { %1697 = vpush %v693_v48  ;;  %v986_v58 = vrot.slane %v985_v55, 2 }
 0x77a   :  { %s1696_s3 = spop %1695 }
 0x77b   :  { %v670_v53 = vstv %s1696_s3 }
 0x77c   :  { %v671_v21 = vmul.f32 %v670_v53, %v1983_v31 }
 0x77e   :  { %v672_v33 = vadd.f32 1e-05, %v671_v21 }
 0x780   :  { %1780 = vrsqrt.f32 %v672_v33  ;;  %vm679_vm15 = vweird.f32 %v672_v33 }
 0x781   :  { %s1698_s24 = spop %1697 }
 0x782   :  { %v695_v37 = vstv %s1698_s24 }
 0x783   :  { %v696_v42 = vmul.f32 %v695_v37, %v1983_v31 }
 0x785   :  { %v2155_v22 = vsub.f32 %v635_v7, %v696_v42  ;;  %v2157_v23 = vsub.f32 %v637_v13, %v696_v42  ;;  %v987_v7 = vadd.f32 %v986_v58, %v985_v55  ;;  %v1670_v13 = vld [vmem:[#allocation7 + $0x28] sm:$0xff]  ;;  %v1039_v55 = vpop.xlane.xlu1 %1038  ;;  %v1025_v58 = vadd.f32 %v1024_v2, %v1023_v39 }
 0x786   :  { %v1781_v24 = vpop.eup %1780  ;;  %948 = vmatpush.bf16.msra.mxu0 %v1670_v13 }
 0x787   :  { %v674_v62 = vmul.f32 %v1781_v24, %v672_v33  ;;  %v699_v25 = vmul.f32 %v2155_v22, %v2155_v22  ;;  %v700_v63 = vmul.f32 %v2157_v23, %v2157_v23  ;;  %vm680_vm14 = vweird.f32 %v1781_v24 }
 0x788   :  { %vm681_vm1 = vmor %vm679_vm15, %vm680_vm14  ;;  %v988_v9 = vrot.slane %v987_v7, 1 }
 0x789   :  { %v675_v26 = vmul.f32 %v1781_v24, %v674_v62  ;;  %v701_v27 = vsel %vm103_vm0, %v699_v25, 0.0  ;;  %v702_v28 = vsel %vm103_vm0, %v700_v63, 0.0 }
 0x78a   :  { %v703_v29 = vadd.f32 %v702_v28, %v701_v27  ;;  %v989_v12 = vadd.f32 %v988_v9, %v987_v7  ;;  %949 = vmatpush.bf16.msra.mxu0 %v1669_v16 }
 0x78b   :  { %v676_v30 = vmul.f32 0.5, %v675_v26 }
 0x78c   :  { %704 = vadd.xlane.f32.xlu2 %v703_v29 }
 0x78d   :  { %v677_v32 = vsub.f32 1.5, %v676_v30  ;;  %v1099_v52 = vpop.xlane.xlu1 %1098 }
 0x78f   :  { %v678_v34 = vmul.f32 %v1781_v24, %v677_v32 }
 0x791   :  { %v682_v35 = vsel %vm681_vm1, %v1781_v24, %v678_v34  ;;  %vm1417_vm1 = vcmask 7168  }
 0x792   :  { %v746_v36 = vmul.f32 %v682_v35, %v2135_v61  ;;  %v747_v43 = vmul.f32 %v682_v35, %v2137_v4 }
 0x794   :  { %v755_v45 = vpack.c.bf16 %v747_v43, %v746_v36 }
 0x796   :  { %1611 = vmatmul.msk.bf16.vlgmr.msrb.gmra.mxu1 %vm103_vm0, %v755_v45 }
 0x7ff   :  { %v705_v57 = vpop.xlane.xlu2 %704 }
 0x800   :  { %v706_v41 = vrot.slane %v705_v57, 4 }
 0x802   :  { %v707_v50 = vadd.f32 %v706_v41, %v705_v57  ;;  %v1040_v57 = vrot.slane %v1039_v55, 4 }
 0x804   :  { %v708_v60 = vrot.slane %v707_v50, 2  ;;  %v1041_v41 = vadd.f32 %v1040_v57, %v1039_v55 }
 0x806   :  { %v709_v61 = vadd.f32 %v708_v60, %v707_v50  ;;  %v1085_v50 = vpop.xlane.xlu0 %1084  ;;  %v1026_v60 = vrot.slane %v1025_v58, 2  ;;  %v1042_v8 = vrot.slane %v1041_v41, 2 }
 0x807   :  { %v1086_v7 = vrot.slane %v1085_v50, 4 }
 0x808   :  { %v710_v4 = vrot.slane %v709_v61, 1  ;;  %v1043_v13 = vadd.f32 %v1042_v8, %v1041_v41  ;;  %v1672_v41 = vld [vmem:[%s2316_s6 + $0x8] sm:$0xff] }
 0x809   :  { %1252 = vmatpush.bf16.msra.mxu1 %v1672_v41 }
 0x80a   :  { %v711_v10 = vadd.f32 %v710_v4, %v709_v61  ;;  %v1100_v4 = vrot.slane %v1099_v52, 4 }
 0x80c   :  { %1699 = vpush %v711_v10  ;;  %v1087_v10 = vadd.f32 %v1086_v7, %v1085_v50 }
 0x80d   :  { %1701 = vpush %v975_v11  ;;  %v1101_v11 = vadd.f32 %v1100_v4, %v1099_v52 }
 0x80e   :  { %1703 = vpush %v989_v12 }
 0x813   :  { %v784_v17 = vpop.f32.mrf.mxu1 }
 0x814   :  { %v798_v0 = vmul.f32 0.044715, %v784_v17  ;;  %v794_v59 = vmul.f32 0.5, %v784_v17 }
 0x816   :  { %v802_v1 = vmul.f32 %v798_v0, %v784_v17 }
 0x818   :  { %v806_v18 = vmul.f32 %v802_v1, %v784_v17 }
 0x81a   :  { %v810_v38 = vadd.f32 %v806_v18, %v784_v17  ;;  %v1088_v17 = vrot.slane %v1087_v10, 2  ;;  %v1102_v18 = vrot.slane %v1101_v11, 2 }
 0x81b   :  { %v786_v40 = vpop.f32.mrf.mxu1 }
 0x81c   :  { %v814_v19 = vmul.f32 0.7978846, %v810_v38  ;;  %v799_v14 = vmul.f32 0.044715, %v786_v40  ;;  %v795_v6 = vmul.f32 0.5, %v786_v40 }
 0x81e   :  { %v803_v15 = vmul.f32 %v799_v14, %v786_v40  ;;  %1782 = vtanh.f32 %v814_v19  ;;  %v1044_v19 = vrot.slane %v1043_v13, 1 }
 0x820   :  { %v807_v56 = vmul.f32 %v803_v15, %v786_v40 }
 0x822   :  { %v811_v20 = vadd.f32 %v807_v56, %v786_v40 }
 0x824   :  { %v815_v54 = vmul.f32 0.7978846, %v811_v20  ;;  %v1783_v44 = vpop.eup %1782  ;;  %v1089_v20 = vadd.f32 %v1088_v17, %v1087_v10 }
 0x825   :  { %v822_v3 = vadd.f32 1.0, %v1783_v44  ;;  %v1045_v44 = vadd.f32 %v1044_v19, %v1043_v13 }
 0x826   :  { %1784 = vtanh.f32 %v815_v54 }
 0x827   :  { %v826_v46 = vmul.f32 %v822_v3, %v794_v59  ;;  %v1103_v3 = vadd.f32 %v1102_v18, %v1101_v11 }
 0x829   :  { %v994_v37 = vsel %vm103_vm0, %v826_v46, 0.0  ;;  %v1050_v25 = vmul.f32 %v826_v46, %v826_v46 }
 0x82b   :  { %v1052_v26 = vsel %vm103_vm0, %v1050_v25, 0.0 }
 0x82c   :  { %v1785_v48 = vpop.eup %1784 }
 0x82d   :  { %v823_v53 = vadd.f32 1.0, %v1785_v48  ;;  %v1090_v48 = vrot.slane %v1089_v20, 1 }
 0x82f   :  { %v827_v21 = vmul.f32 %v823_v53, %v795_v6  ;;  %v1104_v6 = vrot.slane %v1103_v3, 1 }
 0x831   :  { %v922_v33 = vpack.c.bf16 %v827_v21, %v826_v46  ;;  %v995_v42 = vsel %vm103_vm0, %v827_v21, 0.0  ;;  %v1051_v62 = vmul.f32 %v827_v21, %v827_v21  ;;  %v1091_v21 = vadd.f32 %v1090_v48, %v1089_v20  ;;  %v870_v48 = vpop.f32.mrf.mxu2 }
 0x832   :  { %v996_v24 = vadd.f32 %v995_v42, %v994_v37  ;;  %v1894_v37 = vmov 3.0  }
 0x833   :  { %1641 = vmatmul.msk.bf16.vlgmr.msra.gmra.mxu0 %vm103_vm0, %v922_v33  ;;  %v1053_v63 = vsel %vm103_vm0, %v1051_v62, 0.0  ;;  %v1105_v33 = vadd.f32 %v1104_v6, %v1103_v3  ;;  %v907_v3 = vpop.f32.mrf.mxu3 }
 0x834   :  { %997 = vadd.xlane.f32.xlu2 %v996_v24  ;;  %v1054_v27 = vadd.f32 %v1053_v63, %v1052_v26 }
 0x83c   :  { %1055 = vadd.xlane.f32.xlu2 %v1054_v27 }
 0x83d   :  { %s1700_s25 = spop %1699 }
 0x83e   :  { %v713_v28 = vstv %s1700_s25  ;;  %s1702_s26 = spop %1701 }
 0x83f   :  { %v714_v29 = vmul.f32 %v713_v28, %v1983_v31  ;;  %s1704_s0 = spop %1703 }
 0x841   :  { %v715_v30 = vadd.f32 1e-05, %v714_v29 }
 0x843   :  { %1786 = vrsqrt.f32 %v715_v30  ;;  %vm722_vm3 = vweird.f32 %v715_v30 }
 0x844   :  { %1788 = vrcp.f32 %v1894_v37 }
 0x849   :  { %v1787_v32 = vpop.eup %1786 }
 0x84a   :  { %v717_v34 = vmul.f32 %v1787_v32, %v715_v30  ;;  %vm723_vm2 = vweird.f32 %v1787_v32  ;;  %v1789_v62 = vpop.eup %1788 }
 0x84b   :  { %vm724_vm4 = vmor %vm722_vm3, %vm723_vm2  ;;  %v1010_v26 = vmul.f32 3.0, %v1789_v62  ;;  %vm1014_vm5 = vweird.f32 %v1789_v62 }
 0x84c   :  { %v718_v35 = vmul.f32 %v1787_v32, %v717_v34 }
 0x84e   :  { %v719_v36 = vmul.f32 0.5, %v718_v35  ;;  %v977_v35 = vstv %s1702_s26 }
 0x850   :  { %v720_v43 = vsub.f32 1.5, %v719_v36  ;;  %v991_v36 = vstv %s1704_s0 }
 0x852   :  { %v721_v45 = vmul.f32 %v1787_v32, %v720_v43 }
 0x854   :  { %v725_v5 = vsel %vm724_vm4, %v1787_v32, %v721_v45  ;;  %v1011_v32 = vsub.f32 1.0, %v1010_v26 }
 0x855   :  { %v748_v47 = vmul.f32 %v725_v5, %v2155_v22  ;;  %v749_v49 = vmul.f32 %v725_v5, %v2157_v23  ;;  %v1027_v23 = vadd.f32 %v1026_v60, %v1025_v58  ;;  %v978_v5 = vmul.f32 %v977_v35, %v1983_v31  ;;  %v1671_v60 = vld [vmem:[%s2316_s6] sm:$0xff] }
 0x856   :  { %v1012_v45 = vmul.f32 %v1789_v62, %v1011_v32  ;;  %1253 = vmatpush.bf16.msra.mxu1 %v1671_v60 }
 0x857   :  { %v756_v51 = vpack.c.bf16 %v749_v49, %v748_v47  ;;  %v1028_v1 = vrot.slane %v1027_v23, 1  ;;  %v992_v47 = vmul.f32 %v991_v36, %v1983_v31 }
 0x858   :  { %v1013_v2 = vadd.f32 %v1789_v62, %v1012_v45 }
 0x859   :  { %1612 = vmatmul.msk.bf16.gmra.mxu1 %vm103_vm0, %v756_v51  ;;  %v1029_v56 = vadd.f32 %v1028_v1, %v1027_v23  ;;  %v993_v52 = vadd.f32 %v992_v47, %v978_v5 }
 0x85a   :  { %v2188_v4 = vsel %vm1014_vm5, %v1789_v62, %v1013_v2 }
 0x8a7   :  { %v998_v61 = vpop.xlane.xlu2 %997 }
 0x8a8   :  { %v999_v9 = vrot.slane %v998_v61, 4 }
 0x8aa   :  { %v1000_v22 = vadd.f32 %v999_v9, %v998_v61 }
 0x8ac   :  { %v1001_v12 = vrot.slane %v1000_v22, 2 }
 0x8ae   :  { %v1002_v16 = vadd.f32 %v1001_v12, %v1000_v22 }
 0x8af   :  { %v1056_v0 = vpop.xlane.xlu2 %1055 }
 0x8b0   :  { %v1057_v38 = vrot.slane %v1056_v0, 4  ;;  %v1003_v40 = vrot.slane %v1002_v16, 1 }
 0x8b2   :  { %v1058_v14 = vadd.f32 %v1057_v38, %v1056_v0  ;;  %v1004_v15 = vadd.f32 %v1003_v40, %v1002_v16 }
 0x8b4   :  { %v1059_v54 = vrot.slane %v1058_v14, 2  ;;  %1705 = vpush %v1004_v15 }
 0x8b5   :  { %1707 = vpush %v1029_v56 }
 0x8b6   :  { %1709 = vpush %v1045_v44  ;;  %v1060_v59 = vadd.f32 %v1059_v54, %v1058_v14 }
 0x8b8   :  { %v1061_v46 = vrot.slane %v1060_v59, 1 }
 0x8ba   :  { %v1062_v53 = vadd.f32 %v1061_v46, %v1060_v59  ;;  %v951_v46 = vpop.f32.mrf.mxu0 }
 0x8bc   :  { %1711 = vpush %v1062_v53 }
 0x8bd   :  { %1713 = vpush %v1091_v21 }
 0x8be   :  { %1715 = vpush %v1105_v33 }
 0x8d6   :  { %v789_v42 = vpop.f32.mrf.mxu1 }
 0x8d7   :  { %v800_v24 = vmul.f32 0.044715, %v789_v42  ;;  %v796_v22 = vmul.f32 0.5, %v789_v42 }
 0x8d9   :  { %v804_v25 = vmul.f32 %v800_v24, %v789_v42  ;;  %v909_v24 = vpop.f32.mrf.mxu3 }
 0x8db   :  { %v808_v63 = vmul.f32 %v804_v25, %v789_v42  ;;  %v872_v25 = vpop.f32.mrf.mxu2 }
 0x8dd   :  { %v812_v27 = vadd.f32 %v808_v63, %v789_v42  ;;  %v2201_v42 = vld [vmem:[%s2315_s5] ss:$0 sm:$0xff]  ;;  %v953_v63 = vpop.f32.mrf.mxu0 }
 0x8de   :  { %v791_v28 = vpop.f32.mrf.mxu1 }
 0x8df   :  { %v816_v29 = vmul.f32 0.7978846, %v812_v27  ;;  %v801_v30 = vmul.f32 0.044715, %v791_v28  ;;  %v797_v16 = vmul.f32 0.5, %v791_v28  ;;  %v908_v27 = vadd.f32 %v907_v3, %v870_v48 }
 0x8e1   :  { %v805_v34 = vmul.f32 %v801_v30, %v791_v28  ;;  %1790 = vtanh.f32 %v816_v29  ;;  %v961_v32 = vadd.f32 %v951_v46, %v908_v27 }
 0x8e3   :  { %v809_v43 = vmul.f32 %v805_v34, %v791_v28 }
 0x8e5   :  { %v813_v49 = vadd.f32 %v809_v43, %v791_v28  ;;  %s1706_s27 = spop %1705  ;;  %v910_v28 = vadd.f32 %v909_v24, %v872_v25 }
 0x8e6   :  { %v1006_v51 = vstv %s1706_s27  ;;  %s1708_s28 = spop %1707 }
 0x8e7   :  { %v817_v39 = vmul.f32 0.7978846, %v813_v49  ;;  %v1007_v55 = vmul.f32 %v1006_v51, %v1983_v31  ;;  %s1710_s29 = spop %1709  ;;  %v1031_v57 = vstv %s1708_s28  ;;  %v1791_v50 = vpop.eup %1790  ;;  %v962_v34 = vadd.f32 %v953_v63, %v910_v28  ;;  %v1132_v51 = vpop.xlane.xlu0 %1131 }
 0x8e8   :  { %v1047_v58 = vstv %s1710_s29  ;;  %v1032_v61 = vmul.f32 %v1031_v57, %v1983_v31  ;;  %v824_v9 = vadd.f32 1.0, %v1791_v50 }
 0x8e9   :  { %1792 = vtanh.f32 %v817_v39  ;;  %v1008_v7 = vadd.f32 %v1007_v55, %v993_v52  ;;  %v1048_v8 = vmul.f32 %v1047_v58, %v1983_v31  ;;  %v1148_v39 = vpop.xlane.xlu1 %1147  ;;  %v1133_v55 = vrot.slane %v1132_v51, 4 }
 0x8ea   :  { %v828_v0 = vmul.f32 %v824_v9, %v796_v22  ;;  %v1149_v2 = vrot.slane %v1148_v39, 4 }
 0x8eb   :  { %v1016_v11 = vmul.f32 %v2188_v4, %v1008_v7  ;;  %v1049_v12 = vadd.f32 %v1048_v8, %v1032_v61  ;;  %v1134_v57 = vadd.f32 %v1133_v55, %v1132_v51 }
 0x8ec   :  { %v1110_v14 = vsel %vm103_vm0, %v828_v0, 0.0  ;;  %v1159_v59 = vmul.f32 %v828_v0, %v828_v0  ;;  %v1150_v58 = vadd.f32 %v1149_v2, %v1148_v39 }
 0x8ed   :  { %s1712_s12 = spop %1711  ;;  %v1068_v38 = vmul.f32 %v1016_v11, %v1016_v11  ;;  %v1210_v29 = vmul.f32 %v2201_v42, %v1016_v11  ;;  %v1135_v41 = vrot.slane %v1134_v57, 2 }
 0x8ee   :  { %v1064_v10 = vstv %s1712_s12  ;;  %v1161_v53 = vsel %vm103_vm0, %v1159_v59, 0.0  ;;  %v1151_v52 = vrot.slane %v1150_v58, 2  ;;  %s1714_s5 = spop %1713 }
 0x8ef   :  { %v1793_v23 = vpop.eup %1792  ;;  %v1065_v13 = vmul.f32 %v1064_v10, %v1983_v31  ;;  %v1214_v36 = vsub.f32 %v961_v32, %v1210_v29  ;;  %v1215_v43 = vsub.f32 %v962_v34, %v1210_v29  ;;  %v1136_v61 = vadd.f32 %v1135_v41, %v1134_v57  ;;  %s1716_s14 = spop %1715 }
 0x8f0   :  { %v825_v17 = vadd.f32 1.0, %v1793_v23  ;;  %v1152_v9 = vadd.f32 %v1151_v52, %v1150_v58  ;;  %v1107_v3 = vstv %s1716_s14 }
 0x8f1   :  { %v1066_v1 = vadd.f32 %v1065_v13, %v1049_v12  ;;  %v1137_v23 = vrot.slane %v1136_v61, 1  ;;  %v1108_v48 = vmul.f32 %v1107_v3, %v1983_v31 }
 0x8f2   :  { %v829_v18 = vmul.f32 %v825_v17, %v797_v16  ;;  %v1153_v13 = vrot.slane %v1152_v9, 1 }
 0x8f3   :  { %v1067_v40 = vmul.f32 %v1066_v1, %v2188_v4 }
 0x8f4   :  { %v923_v19 = vpack.c.bf16 %v829_v18, %v828_v0  ;;  %v1111_v15 = vsel %vm103_vm0, %v829_v18, 0.0  ;;  %v1160_v54 = vmul.f32 %v829_v18, %v829_v18  ;;  %v1138_v0 = vadd.f32 %v1137_v23, %v1136_v61 }
 0x8f5   :  { %v1069_v56 = vsub.f32 %v1067_v40, %v1068_v38  ;;  %v1112_v20 = vadd.f32 %v1111_v15, %v1110_v14  ;;  %v1154_v18 = vadd.f32 %v1153_v13, %v1152_v9 }
 0x8f6   :  { %1642 = vmatmul.msk.bf16.gmra.mxu0 %vm103_vm0, %v923_v19  ;;  %v1162_v6 = vsel %vm103_vm0, %v1160_v54, 0.0 }
 0x8f7   :  { %v1070_v44 = vadd.f32 1e-05, %v1069_v56  ;;  %1113 = vadd.xlane.f32.xlu2 %v1112_v20  ;;  %v1163_v21 = vadd.f32 %v1162_v6, %v1161_v53 }
 0x8f9   :  { %1794 = vrsqrt.f32 %v1070_v44  ;;  %vm1077_vm7 = vweird.f32 %v1070_v44 }
 0x8ff   :  { %v1795_v33 = vpop.eup %1794  ;;  %1164 = vadd.xlane.f32.xlu2 %v1163_v21 }
 0x900   :  { %v1072_v37 = vmul.f32 %v1795_v33, %v1070_v44  ;;  %vm1078_vm6 = vweird.f32 %v1795_v33  ;;  %v1093_v44 = vstv %s1714_s5 }
 0x901   :  { %vm1079_vm8 = vmor %vm1077_vm7, %vm1078_vm6  ;;  %v1094_v59 = vmul.f32 %v1093_v44, %v1983_v31 }
 0x902   :  { %v1073_v62 = vmul.f32 %v1795_v33, %v1072_v37 }
 0x904   :  { %v1074_v26 = vmul.f32 0.5, %v1073_v62 }
 0x906   :  { %v1075_v30 = vsub.f32 1.5, %v1074_v26 }
 0x908   :  { %v1076_v35 = vmul.f32 %v1795_v33, %v1075_v30 }
 0x90a   :  { %v1080_v45 = vsel %vm1079_vm8, %v1795_v33, %v1076_v35  ;;  %v1109_v33 = vadd.f32 %v1108_v48, %v1094_v59  ;;  %v875_v35 = vpop.f32.mrf.mxu2 }
 0x90b   :  { %v1218_v5 = vmul.f32 %v1214_v36, %v1080_v45  ;;  %v1219_v47 = vmul.f32 %v1215_v43, %v1080_v45  ;;  %v912_v36 = vpop.f32.mrf.mxu3 }
 0x90c   :  { %v913_v2 = vadd.f32 %v912_v36, %v875_v35 }
 0x90d   :  { %v1226_v49 = vpack.c.bf16 %v1219_v47, %v1218_v5 }
 0x90f   :  { %1651 = vmatmul.msk.bf16.vlgmr.msra.gmra.mxu1 %vm103_vm0, %v1226_v49 }
 0x912   :  { %v877_v47 = vpop.f32.mrf.mxu2 }
 0x913   :  { %v914_v51 = vpop.f32.mrf.mxu3 }
 0x914   :  { %v915_v57 = vadd.f32 %v914_v51, %v877_v47 }
 0x96a   :  { %v1114_v50 = vpop.xlane.xlu2 %1113 }
 0x96b   :  { %v1115_v60 = vrot.slane %v1114_v50, 4 }
 0x96d   :  { %v1116_v7 = vadd.f32 %v1115_v60, %v1114_v50 }
 0x96f   :  { %v1117_v8 = vrot.slane %v1116_v7, 2 }
 0x971   :  { %v1118_v22 = vadd.f32 %v1117_v8, %v1116_v7 }
 0x972   :  { %v1165_v10 = vpop.xlane.xlu2 %1164 }
 0x973   :  { %v1166_v11 = vrot.slane %v1165_v10, 4  ;;  %v1119_v12 = vrot.slane %v1118_v22, 1  ;;  %v956_v43 = vpop.f32.mrf.mxu0 }
 0x975   :  { %v1167_v16 = vadd.f32 %v1166_v11, %v1165_v10  ;;  %v1120_v17 = vadd.f32 %v1119_v12, %v1118_v22 }
 0x977   :  { %v1168_v1 = vrot.slane %v1167_v16, 2  ;;  %1717 = vpush %v1120_v17 }
 0x978   :  { %1719 = vpush %v1138_v0 }
 0x979   :  { %1721 = vpush %v1154_v18  ;;  %v1169_v38 = vadd.f32 %v1168_v1, %v1167_v16  ;;  %v1895_v16 = vmov 256.0  }
 0x97b   :  { %v1170_v40 = vrot.slane %v1169_v38, 1  ;;  %v958_v39 = vpop.f32.mrf.mxu0 }
 0x97c   :  { %v964_v41 = vadd.f32 %v958_v39, %v915_v57 }
 0x97d   :  { %v1171_v19 = vadd.f32 %v1170_v40, %v1169_v38 }
 0x97f   :  { %1723 = vpush %v1171_v19 }
 0x98c   :  { %v2205_v14 = vpop.f32.mrf.mxu1 }
 0x98d   :  { %v1266_v56 = vsel %vm1265_vm9, %v2205_v14, 0.0 }
 0x994   :  { %v2207_v15 = vpop.f32.mrf.mxu1 }
 0x995   :  { %v1267_v20 = vsel %vm1265_vm9, %v2207_v15, 0.0 }
 0x996   :  { %v1268_v54 = vadd.f32 %v1267_v20, %v1266_v56 }
 0x998   :  { %1269 = vadd.xlane.f32.xlu0 %v1268_v54 }
 0x9a8   :  { %s1718_s15 = spop %1717 }
 0x9a9   :  { %v1122_v46 = vstv %s1718_s15  ;;  %s1720_s16 = spop %1719 }
 0x9aa   :  { %v1123_v6 = vmul.f32 %v1122_v46, %v1983_v31  ;;  %s1722_s17 = spop %1721  ;;  %v1140_v53 = vstv %s1720_s16 }
 0x9ab   :  { %v1156_v21 = vstv %s1722_s17  ;;  %v1141_v24 = vmul.f32 %v1140_v53, %v1983_v31 }
 0x9ac   :  { %v1124_v37 = vadd.f32 %v1123_v6, %v1109_v33  ;;  %v1157_v62 = vmul.f32 %v1156_v21, %v1983_v31 }
 0x9ae   :  { %v1125_v63 = vmul.f32 %v1124_v37, %v2188_v4  ;;  %v1158_v26 = vadd.f32 %v1157_v62, %v1141_v24 }
 0x9b0   :  { %s1724_s18 = spop %1723  ;;  %v1177_v29 = vmul.f32 %v1125_v63, %v1125_v63 }
 0x9b1   :  { %v1173_v25 = vstv %s1724_s18 }
 0x9b2   :  { %v1174_v27 = vmul.f32 %v1173_v25, %v1983_v31  ;;  %v1212_v31 = vmul.f32 %v2201_v42, %v1125_v63 }
 0x9b4   :  { %v1175_v28 = vadd.f32 %v1174_v27, %v1158_v26  ;;  %v1217_v60 = vsub.f32 %v964_v41, %v1212_v31 }
 0x9b6   :  { %v1176_v30 = vmul.f32 %v1175_v28, %v2188_v4  ;;  %v963_v4 = vadd.f32 %v956_v43, %v913_v2 }
 0x9b8   :  { %v1178_v32 = vsub.f32 %v1176_v30, %v1177_v29  ;;  %v1216_v52 = vsub.f32 %v963_v4, %v1212_v31 }
 0x9ba   :  { %v1179_v34 = vadd.f32 1e-05, %v1178_v32 }
 0x9bc   :  { %1796 = vrsqrt.f32 %v1179_v34  ;;  %vm1186_vm11 = vweird.f32 %v1179_v34 }
 0x9bd   :  { %1798 = vrcp.f32 %v1895_v16 }
 0x9c2   :  { %v1797_v45 = vpop.eup %1796 }
 0x9c3   :  { %v1181_v5 = vmul.f32 %v1797_v45, %v1179_v34  ;;  %vm1187_vm10 = vweird.f32 %v1797_v45  ;;  %v1799_v17 = vpop.eup %1798 }
 0x9c4   :  { %vm1188_vm12 = vmor %vm1186_vm11, %vm1187_vm10  ;;  %v1280_v0 = vmul.f32 256.0, %v1799_v17  ;;  %vm1284_vm13 = vweird.f32 %v1799_v17 }
 0x9c5   :  { %v1182_v49 = vmul.f32 %v1797_v45, %v1181_v5 }
 0x9c6   :  { %v1281_v1 = vsub.f32 1.0, %v1280_v0  ;;  %v2255_v0 = vstv %s2318_s8 }
 0x9c7   :  { %v1183_v55 = vmul.f32 0.5, %v1182_v49 }
 0x9c8   :  { %v1282_v18 = vmul.f32 %v1799_v17, %v1281_v1  ;;  %v1405_v1 = vld [vmem:[%s2311_s1 + $0x8] sm:$0xff] }
 0x9c9   :  { %v1184_v58 = vsub.f32 1.5, %v1183_v55 }
 0x9ca   :  { %v1283_v38 = vadd.f32 %v1799_v17, %v1282_v18 }
 0x9cb   :  { %v1185_v50 = vmul.f32 %v1797_v45, %v1184_v58 }
 0x9cc   :  { %v2223_v40 = vsel %vm1284_vm13, %v1799_v17, %v1283_v38  ;;  %v1404_v17 = vld [vmem:[%s2311_s1] sm:$0xff] }
 0x9cd   :  { %v1189_v7 = vsel %vm1188_vm12, %v1797_v45, %v1185_v50  ;;  %v1409_v38 = vmul.f32 %v2255_v0, %v1404_v17 }
 0x9ce   :  { %v1220_v61 = vmul.f32 %v1216_v52, %v1189_v7  ;;  %v1221_v8 = vmul.f32 %v1217_v60, %v1189_v7  ;;  %v1753_v7 = vld [vmem:[%s2317_s7] ss:$0 sm:$0xff] }
 0x9d0   :  { %v1227_v9 = vpack.c.bf16 %v1221_v8, %v1220_v61 }
 0x9d2   :  { %1652 = vmatmul.msk.bf16.gmra.mxu1 %vm103_vm0, %v1227_v9 }
 0xa0b   :  { %v1270_v22 = vpop.xlane.xlu0 %1269 }
 0xa0c   :  { %v1271_v10 = vrot.slane %v1270_v22, 4 }
 0xa0e   :  { %v1272_v23 = vadd.f32 %v1271_v10, %v1270_v22 }
 0xa10   :  { %v1273_v11 = vrot.slane %v1272_v23, 2 }
 0xa12   :  { %v1274_v42 = vadd.f32 %v1273_v11, %v1272_v23 }
 0xa14   :  { %v1275_v12 = vrot.slane %v1274_v42, 1 }
 0xa16   :  { %v1276_v13 = vadd.f32 %v1275_v12, %v1274_v42 }
 0xa18   :  { %1725 = vpush %v1276_v13 }
 0xa49   :  { %s1726_s19 = spop %1725 }
 0xa4a   :  { %v1278_v19 = vstv %s1726_s19 }
 0xa4b   :  { %v1286_v56 = vmul.f32 %v2223_v40, %v1278_v19  ;;  %v1410_v19 = vmul.f32 %v2255_v0, %v1405_v1 }
 0xa4d   :  { %v1287_v20 = vsub.f32 %v2205_v14, %v1286_v56  ;;  %v1288_v54 = vsub.f32 %v2207_v15, %v1286_v56 }
 0xa4f   :  { %v1260_v44 = vpop.f32.mrf.mxu1  ;;  %v1289_v3 = vmul.f32 %v1287_v20, %v1287_v20  ;;  %v1290_v59 = vmul.f32 %v1288_v54, %v1288_v54 }
 0xa50   :  { %v1316_v21 = vsel %vm1265_vm9, %v1260_v44, 0.0 }
 0xa51   :  { %v1291_v48 = vsel %vm1265_vm9, %v1289_v3, 0.0  ;;  %v1292_v46 = vsel %vm1265_vm9, %v1290_v59, 0.0 }
 0xa52   :  { %v1293_v6 = vadd.f32 %v1292_v46, %v1291_v48 }
 0xa54   :  { %1294 = vadd.xlane.f32.xlu1 %v1293_v6 }
 0xa57   :  { %v1262_v53 = vpop.f32.mrf.mxu1 }
 0xa58   :  { %v1317_v33 = vsel %vm1265_vm9, %v1262_v53, 0.0 }
 0xa59   :  { %v1318_v37 = vadd.f32 %v1317_v33, %v1316_v21 }
 0xa5b   :  { %1319 = vadd.xlane.f32.xlu2 %v1318_v37 }
 0xac7   :  { %v1295_v24 = vpop.xlane.xlu1 %1294 }
 0xac8   :  { %v1296_v14 = vrot.slane %v1295_v24, 4 }
 0xaca   :  { %v1297_v62 = vadd.f32 %v1296_v14, %v1295_v24 }
 0xacc   :  { %v1298_v15 = vrot.slane %v1297_v62, 2 }
 0xace   :  { %v1320_v25 = vpop.xlane.xlu2 %1319  ;;  %v1299_v63 = vadd.f32 %v1298_v15, %v1297_v62 }
 0xacf   :  { %v1321_v26 = vrot.slane %v1320_v25, 4 }
 0xad0   :  { %v1300_v27 = vrot.slane %v1299_v63, 1 }
 0xad1   :  { %v1322_v28 = vadd.f32 %v1321_v26, %v1320_v25 }
 0xad2   :  { %v1301_v29 = vadd.f32 %v1300_v27, %v1299_v63 }
 0xad3   :  { %v1323_v30 = vrot.slane %v1322_v28, 2 }
 0xad4   :  { %1727 = vpush %v1301_v29 }
 0xad5   :  { %v1324_v32 = vadd.f32 %v1323_v30, %v1322_v28 }
 0xad7   :  { %v1325_v34 = vrot.slane %v1324_v32, 1 }
 0xad9   :  { %v1326_v35 = vadd.f32 %v1325_v34, %v1324_v32 }
 0xadb   :  { %1729 = vpush %v1326_v35 }
 0xb05   :  { %s1728_s20 = spop %1727 }
 0xb06   :  { %v1303_v36 = vstv %s1728_s20 }
 0xb07   :  { %v1304_v43 = vmul.f32 %v1303_v36, %v2223_v40 }
 0xb09   :  { %v1305_v45 = vadd.f32 1e-05, %v1304_v43 }
 0xb0b   :  { %1800 = vrsqrt.f32 %v1305_v45  ;;  %vm1312_vm14 = vweird.f32 %v1305_v45 }
 0xb0c   :  { %s1730_s21 = spop %1729 }
 0xb0d   :  { %v1328_v5 = vstv %s1730_s21 }
 0xb0e   :  { %v1329_v47 = vmul.f32 %v1328_v5, %v2223_v40 }
 0xb10   :  { %v2234_v49 = vsub.f32 %v1260_v44, %v1329_v47  ;;  %v2236_v51 = vsub.f32 %v1262_v53, %v1329_v47  ;;  %v1896_v47 = vmov 16.0  }
 0xb11   :  { %v1801_v39 = vpop.eup %1800 }
 0xb12   :  { %v1307_v55 = vmul.f32 %v1801_v39, %v1305_v45  ;;  %v1332_v2 = vmul.f32 %v2234_v49, %v2234_v49  ;;  %v1333_v57 = vmul.f32 %v2236_v51, %v2236_v51  ;;  %vm1313_vm0 = vweird.f32 %v1801_v39 }
 0xb13   :  { %vm1314_vm15 = vmor %vm1312_vm14, %vm1313_vm0 }
 0xb14   :  { %v1308_v31 = vmul.f32 %v1801_v39, %v1307_v55  ;;  %v1334_v58 = vsel %vm1265_vm9, %v1332_v2, 0.0  ;;  %v1335_v4 = vsel %vm1265_vm9, %v1333_v57, 0.0 }
 0xb15   :  { %v1336_v41 = vadd.f32 %v1335_v4, %v1334_v58 }
 0xb16   :  { %v1309_v50 = vmul.f32 0.5, %v1308_v31 }
 0xb17   :  { %1337 = vadd.xlane.f32.xlu0 %v1336_v41 }
 0xb18   :  { %v1310_v52 = vsub.f32 1.5, %v1309_v50  ;;  %v1406_v50 = vld [vmem:[%s2311_s1 + $0x10] sm:$0xff] }
 0xb1a   :  { %v1311_v60 = vmul.f32 %v1801_v39, %v1310_v52 }
 0xb1c   :  { %v1315_v61 = vsel %vm1314_vm15, %v1801_v39, %v1311_v60 }
 0xb1d   :  { %v1379_v8 = vmul.f32 %v1315_v61, %v1287_v20  ;;  %v1380_v9 = vmul.f32 %v1315_v61, %v1288_v54 }
 0xb1f   :  { %v1387_v22 = vmul.f32 %v1753_v7, %v1379_v8  ;;  %v1388_v10 = vmul.f32 %v1753_v7, %v1380_v9  ;;  %v1411_v9 = vmul.f32 %v2255_v0, %v1406_v50 }
 0xb21   :  { %v1391_v23 = vsel %vm1265_vm9, %v1387_v22, 0.0  ;;  %v1394_v11 = vsel %vm1265_vm9, %v1388_v10, 0.0 }
 0xb22   :  { %1392 = vadd.xlane.f32.xlu1 %v1391_v23  ;;  %1395 = vadd.xlane.f32.xlu2 %v1394_v11 }
 0xb8a   :  { %v1338_v42 = vpop.xlane.xlu0 %1337 }
 0xb8b   :  { %v1339_v12 = vrot.slane %v1338_v42, 4 }
 0xb8d   :  { %v1340_v13 = vadd.f32 %v1339_v12, %v1338_v42 }
 0xb8f   :  { %v1341_v16 = vrot.slane %v1340_v13, 2 }
 0xb91   :  { %v1342_v18 = vadd.f32 %v1341_v16, %v1340_v13 }
 0xb93   :  { %v1343_v56 = vrot.slane %v1342_v18, 1 }
 0xb95   :  { %v1393_v20 = vpop.xlane.xlu1 %1392  ;;  %v1396_v54 = vpop.xlane.xlu2 %1395  ;;  %v1344_v44 = vadd.f32 %v1343_v56, %v1342_v18 }
 0xb96   :  { %v1413_v3 = vadd.f32 %v1409_v38, %v1393_v20  ;;  %v1414_v59 = vadd.f32 %v1410_v19, %v1396_v54 }
 0xb97   :  { %1731 = vpush %v1344_v44 }
 0xb98   :  { %v1418_v48 = vsel %vm1417_vm1, %v1413_v3, 0.0  ;;  %v1419_v46 = vsel %vm1417_vm1, %v1414_v59, 0.0 }
 0xb99   :  { %v1420_v6 = vadd.f32 %v1419_v46, %v1418_v48 }
 0xb9b   :  { %1421 = vadd.xlane.f32.xlu0 %v1420_v6 }
 0xbc8   :  { %s1732_s8 = spop %1731 }
 0xbc9   :  { %v1346_v53 = vstv %s1732_s8 }
 0xbca   :  { %v1347_v21 = vmul.f32 %v1346_v53, %v2223_v40 }
 0xbcc   :  { %v1348_v33 = vadd.f32 1e-05, %v1347_v21 }
 0xbce   :  { %1802 = vrsqrt.f32 %v1348_v33  ;;  %vm1355_vm3 = vweird.f32 %v1348_v33 }
 0xbcf   :  { %1804 = vrcp.f32 %v1896_v47 }
 0xbd4   :  { %v1803_v37 = vpop.eup %1802 }
 0xbd5   :  { %v1350_v24 = vmul.f32 %v1803_v37, %v1348_v33  ;;  %vm1356_vm2 = vweird.f32 %v1803_v37 }
 0xbd6   :  { %vm1357_vm4 = vmor %vm1355_vm3, %vm1356_vm2 }
 0xbd7   :  { %v1351_v14 = vmul.f32 %v1803_v37, %v1350_v24 }
 0xbd9   :  { %v1352_v62 = vmul.f32 0.5, %v1351_v14 }
 0xbdb   :  { %v1353_v15 = vsub.f32 1.5, %v1352_v62 }
 0xbdd   :  { %v1354_v25 = vmul.f32 %v1803_v37, %v1353_v15 }
 0xbdf   :  { %v1358_v63 = vsel %vm1357_vm4, %v1803_v37, %v1354_v25 }
 0xbe0   :  { %v1382_v26 = vmul.f32 %v1358_v63, %v2236_v51  ;;  %v1381_v27 = vmul.f32 %v1358_v63, %v2234_v49  ;;  %v1805_v51 = vpop.eup %1804 }
 0xbe1   :  { %v1432_v49 = vmul.f32 16.0, %v1805_v51  ;;  %vm1436_vm5 = vweird.f32 %v1805_v51 }
 0xbe2   :  { %v1390_v28 = vmul.f32 %v1753_v7, %v1382_v26  ;;  %v1389_v29 = vmul.f32 %v1753_v7, %v1381_v27  ;;  %v1407_v7 = vld [vmem:[%s2311_s1 + $0x18] sm:$0xff] }
 0xbe3   :  { %v1433_v39 = vsub.f32 1.0, %v1432_v49  ;;  %v1412_v10 = vmul.f32 %v2255_v0, %v1407_v7 }
 0xbe4   :  { %v1400_v40 = vsel %vm1265_vm9, %v1390_v28, 0.0  ;;  %v1397_v30 = vsel %vm1265_vm9, %v1389_v29, 0.0 }
 0xbe5   :  { %1401 = vadd.xlane.f32.xlu2 %v1400_v40  ;;  %1398 = vadd.xlane.f32.xlu1 %v1397_v30  ;;  %v1434_v55 = vmul.f32 %v1805_v51, %v1433_v39 }
 0xbe7   :  { %v1435_v2 = vadd.f32 %v1805_v51, %v1434_v55 }
 0xbe9   :  { %v2269_v57 = vsel %vm1436_vm5, %v1805_v51, %v1435_v2 }
 0xc0e   :  { %v1422_v32 = vpop.xlane.xlu0 %1421 }
 0xc0f   :  { %v1423_v34 = vrot.slane %v1422_v32, 4 }
 0xc11   :  { %v1424_v35 = vadd.f32 %v1423_v34, %v1422_v32 }
 0xc13   :  { %v1425_v36 = vrot.slane %v1424_v35, 2 }
 0xc15   :  { %v1426_v43 = vadd.f32 %v1425_v36, %v1424_v35 }
 0xc17   :  { %v1427_v45 = vrot.slane %v1426_v43, 1 }
 0xc19   :  { %v1428_v5 = vadd.f32 %v1427_v45, %v1426_v43 }
 0xc1b   :  { %1733 = vpush %v1428_v5 }
 0xc4c   :  { %s1734_s0 = spop %1733 }
 0xc4d   :  { %v1430_v31 = vstv %s1734_s0 }
 0xc4e   :  { %v1438_v58 = vmul.f32 %v2269_v57, %v1430_v31 }
 0xc50   :  { %v2272_v4 = vsub.f32 %v1413_v3, %v1438_v58  ;;  %v1440_v41 = vsub.f32 %v1414_v59, %v1438_v58 }
 0xc52   :  { %v1441_v52 = vmul.f32 %v2272_v4, %v2272_v4  ;;  %v1442_v60 = vmul.f32 %v1440_v41, %v1440_v41 }
 0xc54   :  { %v1443_v61 = vsel %vm1417_vm1, %v1441_v52, 0.0  ;;  %v1444_v8 = vsel %vm1417_vm1, %v1442_v60, 0.0 }
 0xc55   :  { %v1445_v22 = vadd.f32 %v1444_v8, %v1443_v61 }
 0xc57   :  { %1446 = vadd.xlane.f32.xlu0 %v1445_v22 }
 0xc58   :  { %v1399_v23 = vpop.xlane.xlu1 %1398  ;;  %v1402_v11 = vpop.xlane.xlu2 %1401 }
 0xc59   :  { %v1415_v42 = vadd.f32 %v1411_v9, %v1399_v23  ;;  %v1416_v12 = vadd.f32 %v1412_v10, %v1402_v11 }
 0xc5b   :  { %v1468_v13 = vsel %vm1417_vm1, %v1415_v42, 0.0  ;;  %v1469_v16 = vsel %vm1417_vm1, %v1416_v12, 0.0 }
 0xc5c   :  { %v1470_v17 = vadd.f32 %v1469_v16, %v1468_v13 }
 0xc5e   :  { %1471 = vadd.xlane.f32.xlu1 %v1470_v17 }
 0xcca   :  { %v1447_v1 = vpop.xlane.xlu0 %1446 }
 0xccb   :  { %v1448_v18 = vrot.slane %v1447_v1, 4 }
 0xccd   :  { %v1449_v38 = vadd.f32 %v1448_v18, %v1447_v1 }
 0xccf   :  { %v1450_v19 = vrot.slane %v1449_v38, 2 }
 0xcd1   :  { %v1451_v56 = vadd.f32 %v1450_v19, %v1449_v38  ;;  %v1472_v20 = vpop.xlane.xlu1 %1471 }
 0xcd2   :  { %v1473_v54 = vrot.slane %v1472_v20, 4 }
 0xcd3   :  { %v1452_v44 = vrot.slane %v1451_v56, 1 }
 0xcd4   :  { %v1474_v0 = vadd.f32 %v1473_v54, %v1472_v20 }
 0xcd5   :  { %v1453_v3 = vadd.f32 %v1452_v44, %v1451_v56 }
 0xcd6   :  { %v1475_v59 = vrot.slane %v1474_v0, 2 }
 0xcd7   :  { %1735 = vpush %v1453_v3 }
 0xcd8   :  { %v1476_v48 = vadd.f32 %v1475_v59, %v1474_v0 }
 0xcda   :  { %v1477_v46 = vrot.slane %v1476_v48, 1 }
 0xcdc   :  { %v1478_v6 = vadd.f32 %v1477_v46, %v1476_v48 }
 0xcde   :  { %1737 = vpush %v1478_v6 }
 0xd08   :  { %s1736_s1 = spop %1735 }
 0xd09   :  { %v1455_v53 = vstv %s1736_s1 }
 0xd0a   :  { %v1456_v21 = vmul.f32 %v1455_v53, %v2269_v57 }
 0xd0c   :  { %v1457_v33 = vadd.f32 1e-05, %v1456_v21 }
 0xd0e   :  { %1806 = vrsqrt.f32 %v1457_v33  ;;  %vm1464_vm7 = vweird.f32 %v1457_v33 }
 0xd0f   :  { %s1738_s30 = spop %1737 }
 0xd10   :  { %v1480_v37 = vstv %s1738_s30 }
 0xd11   :  { %v1481_v24 = vmul.f32 %v1480_v37, %v2269_v57 }
 0xd13   :  { %v1482_v14 = vsub.f32 %v1415_v42, %v1481_v24  ;;  %v1483_v62 = vsub.f32 %v1416_v12, %v1481_v24 }
 0xd14   :  { %v1807_v15 = vpop.eup %1806 }
 0xd15   :  { %v1459_v25 = vmul.f32 %v1807_v15, %v1457_v33  ;;  %v1484_v63 = vmul.f32 %v1482_v14, %v1482_v14  ;;  %v1485_v26 = vmul.f32 %v1483_v62, %v1483_v62  ;;  %vm1465_vm6 = vweird.f32 %v1807_v15 }
 0xd16   :  { %vm1466_vm8 = vmor %vm1464_vm7, %vm1465_vm6 }
 0xd17   :  { %v1460_v27 = vmul.f32 %v1807_v15, %v1459_v25  ;;  %v1486_v28 = vsel %vm1417_vm1, %v1484_v63, 0.0  ;;  %v1487_v29 = vsel %vm1417_vm1, %v1485_v26, 0.0 }
 0xd18   :  { %v1488_v40 = vadd.f32 %v1487_v29, %v1486_v28 }
 0xd19   :  { %v1461_v30 = vmul.f32 0.5, %v1460_v27 }
 0xd1a   :  { %1489 = vadd.xlane.f32.xlu2 %v1488_v40 }
 0xd1b   :  { %v1462_v32 = vsub.f32 1.5, %v1461_v30 }
 0xd1d   :  { %v1463_v34 = vmul.f32 %v1807_v15, %v1462_v32 }
 0xd1f   :  { %v1467_v35 = vsel %vm1466_vm8, %v1807_v15, %v1463_v34 }
 0xd20   :  { %v1531_v36 = vmul.f32 %v1467_v35, %v2272_v4  ;;  %v1532_v43 = vmul.f32 %v1467_v35, %v1440_v41 }
 0xd22   :  { %1535 = vst.msk [vmem:[%s2319_s9] sm:$0xff] %vm1417_vm1, %v1531_v36 }
 0xd23   :  { %1536 = vst.msk [vmem:[%s2319_s9 + $0x8] sm:$0xff] %vm1417_vm1, %v1532_v43 }
 0xd8d   :  { %v1490_v45 = vpop.xlane.xlu2 %1489 }
 0xd8e   :  { %v1491_v5 = vrot.slane %v1490_v45, 4 }
 0xd90   :  { %v1492_v47 = vadd.f32 %v1491_v5, %v1490_v45 }
 0xd92   :  { %v1493_v51 = vrot.slane %v1492_v47, 2 }
 0xd94   :  { %v1494_v49 = vadd.f32 %v1493_v51, %v1492_v47 }
 0xd96   :  { %v1495_v39 = vrot.slane %v1494_v49, 1 }
 0xd98   :  { %v1496_v55 = vadd.f32 %v1495_v39, %v1494_v49 }
 0xd9a   :  { %1739 = vpush %v1496_v55 }
 0xdcb   :  { %s1740_s13 = spop %1739 }
 0xdcc   :  { %v1498_v2 = vstv %s1740_s13 }
 0xdcd   :  { %v1499_v31 = vmul.f32 %v1498_v2, %v2269_v57 }
 0xdcf   :  { %v1500_v58 = vadd.f32 1e-05, %v1499_v31 }
 0xdd1   :  { %1808 = vrsqrt.f32 %v1500_v58  ;;  %vm1507_vm10 = vweird.f32 %v1500_v58 }
 0xdd7   :  { %v1809_v4 = vpop.eup %1808 }
 0xdd8   :  { %v1502_v41 = vmul.f32 %v1809_v4, %v1500_v58  ;;  %vm1508_vm9 = vweird.f32 %v1809_v4 }
 0xdd9   :  { %vm1509_vm11 = vmor %vm1507_vm10, %vm1508_vm9 }
 0xdda   :  { %v1503_v50 = vmul.f32 %v1809_v4, %v1502_v41 }
 0xddc   :  { %v1504_v52 = vmul.f32 0.5, %v1503_v50 }
 0xdde   :  { %v1505_v60 = vsub.f32 1.5, %v1504_v52 }
 0xde0   :  { %v1506_v7 = vmul.f32 %v1809_v4, %v1505_v60 }
 0xde2   :  { %v1510_v61 = vsel %vm1509_vm11, %v1809_v4, %v1506_v7 }
 0xde3   :  { %v1533_v8 = vmul.f32 %v1510_v61, %v1482_v14  ;;  %v1534_v9 = vmul.f32 %v1510_v61, %v1483_v62 }
 0xde5   :  { %1537 = vst.msk [vmem:[%s2319_s9 + $0x10] sm:$0xff] %vm1417_vm1, %v1533_v8 }
 0xde6   :  { %1538 = vst.msk [vmem:[%s2319_s9 + $0x18] sm:$0xff] %vm1417_vm1, %v1534_v9 }
 0xde7   :  { %1543 = vsyncpa [#allocation4], 1 }
 0xde8   :  { %1544 = vsyncpa [#allocation6], 1 }

</bundles_post_ra>
